<compile_context>
chip_gen: v5e
topology: v5e:2x2
jax: 0.10.0
libtpu: 0.0.40
codegen_flags: <defaults>
</compile_context>

<pallas_src>
import functools

import jax
import jax.numpy as jnp
from jax.experimental import pallas as pl
from jax.experimental.pallas import tpu as pltpu


# ----------------------------------------------------------------------------
# Fused kernel: upsample + conv1+BN+ReLU + conv2+BN+ReLU + gates + combine.
#   grid = (N,), one image per program, all intermediates VMEM-resident.
#   Activation layout inside the kernel: rows (H, W*C), lane dim = W*C = 128.
# ----------------------------------------------------------------------------
def _decoder_kernel(x_ref, A_ref, Bexp_ref, m1_ref, b1_ref, m2_ref, b2_ref,
                    wsgb_ref, eexp_ref, ttile_ref,
                    w1g_ref, b1g_ref, w2g_ref, b2g_ref, bsg_ref,
                    o_ref, xp1, xp2, *, Ho, Wo, Cin, C1, C2):
    f32 = jnp.float32

    # ---- bilinear x2 upsample (align_corners=True) as two matmuls ----------
    x0 = x_ref[0]                                                # (H0, W0*Cin)
    t = jnp.dot(A_ref[...], x0, preferred_element_type=f32)      # (Ho, W0*Cin)
    up = jnp.dot(t, Bexp_ref[...], preferred_element_type=f32)   # (Ho, Wo*Cin)

    # ---- conv1 (3x3, pad=1) + folded BN + ReLU ------------------------------
    # Horizontal halo is folded into the banded matrices m1[dy]; the vertical
    # halo (one zero row above / below) lives in the VMEM scratch xp1.
    zr1 = jnp.zeros((1, Wo * Cin), f32)
    xp1[0:1, :] = zr1
    xp1[Ho + 1:Ho + 2, :] = zr1
    xp1[1:Ho + 1, :] = up
    acc1 = jnp.dot(up, m1_ref[1], preferred_element_type=f32)          # dy = 1
    acc1 += jnp.dot(xp1[0:Ho, :], m1_ref[0], preferred_element_type=f32)
    acc1 += jnp.dot(xp1[2:Ho + 2, :], m1_ref[2], preferred_element_type=f32)
    a1 = jnp.maximum(acc1 + b1_ref[...], 0.0)                    # (Ho, Wo*C1)

    # ---- conv2 (3x3, pad=1) + folded BN + ReLU ------------------------------
    zr2 = jnp.zeros((1, Wo * C1), f32)
    xp2[0:1, :] = zr2
    xp2[Ho + 1:Ho + 2, :] = zr2
    xp2[1:Ho + 1, :] = a1
    acc2 = jnp.dot(a1, m2_ref[1], preferred_element_type=f32)          # dy = 1
    acc2 += jnp.dot(xp2[0:Ho, :], m2_ref[0], preferred_element_type=f32)
    acc2 += jnp.dot(xp2[2:Ho + 2, :], m2_ref[2], preferred_element_type=f32)
    a2 = jnp.maximum(acc2 + b2_ref[...], 0.0)                    # (Ho, Wo*C2)

    # ---- spatial gate: g1[h,w] = sigmoid(sum_c a2[h,w,c]*wsg[c] + bsg) ------
    # wsgb is block-diagonal (Wo*C2, Wo); eexp replicates (Ho,Wo) -> (Ho,Wo*C2)
    g1 = jax.nn.sigmoid(
        jnp.dot(a2, wsgb_ref[...], preferred_element_type=f32) + bsg_ref[0, 0])
    g1e = jnp.dot(g1, eexp_ref[...], preferred_element_type=f32)  # (Ho, Wo*C2)

    # ---- channel gate: global max pool -> 1x1 -> relu -> 1x1 -> sigmoid -----
    colmax = jnp.max(a2, axis=0, keepdims=True)                  # (1, Wo*C2)
    pooled = colmax[:, 0:C2]
    for w in range(1, Wo):                                       # max over W
        pooled = jnp.maximum(pooled, colmax[:, w * C2:(w + 1) * C2])
    h = jnp.maximum(
        jnp.dot(pooled, w1g_ref[...], preferred_element_type=f32)
        + b1g_ref[...], 0.0)                                     # (1, C2//2)
    g2 = jax.nn.sigmoid(
        jnp.dot(h, w2g_ref[...], preferred_element_type=f32) + b2g_ref[...])
    g2e = jnp.dot(g2, ttile_ref[...], preferred_element_type=f32)  # (1, Wo*C2)

    # ---- combine: out = (g1 + g2) * x  (single multiply) --------------------
    o_ref[0] = (g1e + g2e) * a2


def _decoder_pallas(x_rows, A, Bexp, m1, b1row, m2, b2row,
                    wsg_blk, eexp, ttile, wcg1, bcg1, wcg2, bcg2, bsg,
                    *, Ho, Wo, Cin, C1, C2):
    N, H0, _ = x_rows.shape
    kernel = functools.partial(_decoder_kernel, Ho=Ho, Wo=Wo,
                               Cin=Cin, C1=C1, C2=C2)
    const2 = lambda n: (0, 0)
    const3 = lambda n: (0, 0, 0)
    return pl.pallas_call(
        kernel,
        out_shape=jax.ShapeDtypeStruct((N, Ho, Wo * C2), jnp.float32),
        grid=(N,),
        in_specs=[
            pl.BlockSpec((1, H0, W0C := x_rows.shape[2]), lambda n: (n, 0, 0)),
            pl.BlockSpec(A.shape, const2),        # upsample row-interp
            pl.BlockSpec(Bexp.shape, const2),     # upsample col-interp (kron)
            pl.BlockSpec(m1.shape, const3),       # conv1 banded mats (BN folded)
            pl.BlockSpec(b1row.shape, const2),    # conv1 bias row
            pl.BlockSpec(m2.shape, const3),       # conv2 banded mats
            pl.BlockSpec(b2row.shape, const2),    # conv2 bias row
            pl.BlockSpec(wsg_blk.shape, const2),  # spatial gate block-diag
            pl.BlockSpec(eexp.shape, const2),     # spatial gate expand
            pl.BlockSpec(ttile.shape, const2),    # channel gate tile
            pl.BlockSpec(wcg1.shape, const2),     # channel gate 1x1 #1
            pl.BlockSpec(bcg1.shape, const2),
            pl.BlockSpec(wcg2.shape, const2),     # channel gate 1x1 #2
            pl.BlockSpec(bcg2.shape, const2),
            pl.BlockSpec(memory_space=pltpu.MemorySpace.SMEM),  # bsg scalar
        ],
        out_specs=pl.BlockSpec((1, Ho, Wo * C2), lambda n: (n, 0, 0)),
        scratch_shapes=[
            pltpu.VMEM((Ho + 2, Wo * Cin), jnp.float32),  # conv1 vertical halo
            pltpu.VMEM((Ho + 2, Wo * C1), jnp.float32),   # conv2 vertical halo
        ],
        compiler_params=pltpu.CompilerParams(
            dimension_semantics=("parallel",)),
    )(x_rows, A, Bexp, m1, b1row, m2, b2row,
      wsg_blk, eexp, ttile, wcg1, bcg1, wcg2, bcg2, bsg)


# ----------------------------------------------------------------------------
# Wrapper-side precomputation (tiny matrices; traced under jit).
# ----------------------------------------------------------------------------
def _interp_matrix(out_size, in_size):
    """align_corners=True bilinear interpolation matrix, shape (out, in)."""
    if in_size == 1:
        return jnp.ones((out_size, 1), jnp.float32)
    src = (jnp.arange(out_size, dtype=jnp.float32)
           * (in_size - 1) / (out_size - 1))
    i0 = jnp.minimum(jnp.floor(src).astype(jnp.int32), in_size - 2)
    fy = src - i0.astype(jnp.float32)
    m0 = jax.nn.one_hot(i0, in_size, dtype=jnp.float32)
    m1 = jax.nn.one_hot(i0 + 1, in_size, dtype=jnp.float32)
    return m0 * (1.0 - fy)[:, None] + m1 * fy[:, None]


def _row_conv_matrices(w_hwio, width):
    """Banded matrices for a 3x3 / pad=1 conv on (H, W*Ci) row layout.

    Returns (3, width*Ci, width*Co).  mats[dy] multiplies the input row that is
    vertically offset by (dy - 1); horizontal zero-padding is folded in by
    omitting out-of-range taps.
    """
    _, _, Ci, Co = w_hwio.shape
    mats = []
    for dy in range(3):
        M = jnp.zeros((width * Ci, width * Co), jnp.float32)
        for dx in range(3):
            wo = jnp.arange(width)
            wi = wo + dx - 1
            valid = ((wi >= 0) & (wi < width)).astype(jnp.float32)
            S = jnp.zeros((width, width), jnp.float32)
            S = S.at[jnp.clip(wi, 0, width - 1), wo].add(valid)
            M = M + jnp.kron(S, w_hwio[dy, dx])
        mats.append(M)
    return jnp.stack(mats)


def decoder_forward(x_nchw, params):
    N, Cin, H0, W0 = x_nchw.shape
    C1 = params["w1"].shape[-1]
    C2 = params["w2"].shape[-1]
    Ho, Wo = 2 * H0, 2 * W0

    # NCHW -> lane-dense rows (N, H0, W0*Cin); W0*Cin = 128 for the test shape.
    x_rows = jnp.transpose(x_nchw, (0, 2, 3, 1)).astype(jnp.float32)
    x_rows = x_rows.reshape(N, H0, W0 * Cin)

    # Separable bilinear upsample matrices (align_corners=True).
    A = _interp_matrix(Ho, H0)                                    # (Ho, H0)
    B = _interp_matrix(Wo, W0)                                    # (Wo, W0)
    Bexp = jnp.kron(B.T, jnp.eye(Cin, dtype=jnp.float32))         # (W0*Cin, Wo*Cin)

    # Fold BN scale into the conv weights; bias becomes one row add.
    m1 = _row_conv_matrices(params["w1"] * params["bn1_scale"], Wo)
    m2 = _row_conv_matrices(params["w2"] * params["bn2_scale"], Wo)
    b1row = jnp.tile(params["bn1_bias"], Wo)[None, :]             # (1, Wo*C1)
    b2row = jnp.tile(params["bn2_bias"], Wo)[None, :]             # (1, Wo*C2)

    # Gate helper matrices (lane-dense reductions / broadcasts as matmuls).
    eye_w = jnp.eye(Wo, dtype=jnp.float32)
    wsg_blk = jnp.kron(eye_w, params["wsg"].reshape(C2, 1))       # (Wo*C2, Wo)
    eexp = jnp.kron(eye_w, jnp.ones((1, C2), jnp.float32))        # (Wo, Wo*C2)
    ttile = jnp.kron(jnp.ones((1, Wo), jnp.float32),
                     jnp.eye(C2, dtype=jnp.float32))              # (C2, Wo*C2)

    out_rows = _decoder_pallas(
        x_rows, A, Bexp, m1, b1row, m2, b2row, wsg_blk, eexp, ttile,
        params["wcg1"], params["bcg1"], params["wcg2"], params["bcg2"],
        params["bsg"], Ho=Ho, Wo=Wo, Cin=Cin, C1=C1, C2=C2)

    out = out_rows.reshape(N, Ho, Wo, C2)
    return jnp.transpose(out, (0, 3, 1, 2))       # back to NCHW


# ----------------------------------------------------------------------------
# Parameter construction (deterministic, in-script).
# ----------------------------------------------------------------------------
def make_params(key, in_channels, channels, out_channels):
    ks = jax.random.split(key, 16)
    p = {}

    def w(k, shape, scale=0.1):
        return (scale * jax.random.normal(k, shape)).astype(jnp.float32)

    # ConvBn2d #1 (HWIO conv weight + folded inference BN)
    p["w1"] = w(ks[0], (3, 3, in_channels, channels))
    gamma1 = 1.0 + 0.1 * jax.random.normal(ks[1], (channels,))
    beta1 = 0.1 * jax.random.normal(ks[2], (channels,))
    mean1 = 0.1 * jax.random.normal(ks[3], (channels,))
    var1 = jnp.abs(1.0 + 0.1 * jax.random.normal(ks[4], (channels,)))
    s1 = gamma1 / jnp.sqrt(var1 + 1e-5)
    p["bn1_scale"] = s1.astype(jnp.float32)
    p["bn1_bias"] = (beta1 - mean1 * s1).astype(jnp.float32)

    # ConvBn2d #2
    p["w2"] = w(ks[5], (3, 3, channels, out_channels))
    gamma2 = 1.0 + 0.1 * jax.random.normal(ks[6], (out_channels,))
    beta2 = 0.1 * jax.random.normal(ks[7], (out_channels,))
    mean2 = 0.1 * jax.random.normal(ks[8], (out_channels,))
    var2 = jnp.abs(1.0 + 0.1 * jax.random.normal(ks[9], (out_channels,)))
    s2 = gamma2 / jnp.sqrt(var2 + 1e-5)
    p["bn2_scale"] = s2.astype(jnp.float32)
    p["bn2_bias"] = (beta2 - mean2 * s2).astype(jnp.float32)

    # SpatialGate: 1x1 conv out_channels -> 1 (with bias)
    p["wsg"] = w(ks[10], (out_channels,))
    p["bsg"] = w(ks[11], (1, 1))

    # ChannelGate: 1x1 conv out -> out//2 (relu), 1x1 conv out//2 -> out
    half = out_channels // 2
    p["wcg1"] = w(ks[12], (out_channels, half))
    p["bcg1"] = w(ks[13], (1, half))
    p["wcg2"] = w(ks[14], (half, out_channels))
    p["bcg2"] = w(ks[15], (1, out_channels))

    # alpha1/alpha2/alpha3 exist in __init__ but are unused in forward.
    return p


if __name__ == "__main__":
    key = jax.random.PRNGKey(0)
    k_x, k_p = jax.random.split(key)

    N, in_channels, channels, out_channels = 2, 16, 8, 8
    H = W = 8  # upsampled to 16x16 inside the forward pass

    x = jax.random.normal(k_x, (N, in_channels, H, W), dtype=jnp.float32)
    params = make_params(k_p, in_channels, channels, out_channels)

    out = jax.jit(decoder_forward)(x, params)
    out = jax.block_until_ready(out)
    assert out.shape == (N, out_channels, 2 * H, 2 * W), out.shape
    print("KERNEL_OK")
</pallas_src>

<mosaic_0001>
module attributes {stable_mosaic.version = 11 : i64} {
  func.func @_decoder_kernel(%arg0: i32, %arg1: memref<1x8x128xf32, #tpu.memory_space<vmem>>, %arg2: memref<16x8xf32, #tpu.memory_space<vmem>>, %arg3: memref<128x256xf32, #tpu.memory_space<vmem>>, %arg4: memref<3x256x128xf32, #tpu.memory_space<vmem>>, %arg5: memref<1x128xf32, #tpu.memory_space<vmem>>, %arg6: memref<3x128x128xf32, #tpu.memory_space<vmem>>, %arg7: memref<1x128xf32, #tpu.memory_space<vmem>>, %arg8: memref<128x16xf32, #tpu.memory_space<vmem>>, %arg9: memref<16x128xf32, #tpu.memory_space<vmem>>, %arg10: memref<8x128xf32, #tpu.memory_space<vmem>>, %arg11: memref<8x4xf32, #tpu.memory_space<vmem>>, %arg12: memref<1x4xf32, #tpu.memory_space<vmem>>, %arg13: memref<4x8xf32, #tpu.memory_space<vmem>>, %arg14: memref<1x8xf32, #tpu.memory_space<vmem>>, %arg15: memref<1x1xf32, #tpu.memory_space<smem>>, %arg16: memref<1x16x128xf32, #tpu.memory_space<vmem>>, %arg17: memref<18x256xf32, #tpu.memory_space<vmem>>, %arg18: memref<18x128xf32, #tpu.memory_space<vmem>>) attributes {dimension_semantics = [#tpu.dimension_semantics<parallel>], iteration_bounds = array<i64: 2>, scalar_prefetch = 0 : i64, scratch_operands = 2 : i64, tpu.core_type = #tpu.core_type<tc>, window_params = [{transform_indices = @transform_0, window_bounds = array<i64: 1, 8, 128>}, {pipeline_mode = #tpu.pipeline_mode<synchronous>, transform_indices = @transform_1, window_bounds = array<i64: 16, 8>}, {pipeline_mode = #tpu.pipeline_mode<synchronous>, transform_indices = @transform_2, window_bounds = array<i64: 128, 256>}, {pipeline_mode = #tpu.pipeline_mode<synchronous>, transform_indices = @transform_3, window_bounds = array<i64: 3, 256, 128>}, {pipeline_mode = #tpu.pipeline_mode<synchronous>, transform_indices = @transform_4, window_bounds = array<i64: 1, 128>}, {pipeline_mode = #tpu.pipeline_mode<synchronous>, transform_indices = @transform_5, window_bounds = array<i64: 3, 128, 128>}, {pipeline_mode = #tpu.pipeline_mode<synchronous>, transform_indices = @transform_6, window_bounds = array<i64: 1, 128>}, {pipeline_mode = #tpu.pipeline_mode<synchronous>, transform_indices = @transform_7, window_bounds = array<i64: 128, 16>}, {pipeline_mode = #tpu.pipeline_mode<synchronous>, transform_indices = @transform_8, window_bounds = array<i64: 16, 128>}, {pipeline_mode = #tpu.pipeline_mode<synchronous>, transform_indices = @transform_9, window_bounds = array<i64: 8, 128>}, {pipeline_mode = #tpu.pipeline_mode<synchronous>, transform_indices = @transform_10, window_bounds = array<i64: 8, 4>}, {pipeline_mode = #tpu.pipeline_mode<synchronous>, transform_indices = @transform_11, window_bounds = array<i64: 1, 4>}, {pipeline_mode = #tpu.pipeline_mode<synchronous>, transform_indices = @transform_12, window_bounds = array<i64: 4, 8>}, {pipeline_mode = #tpu.pipeline_mode<synchronous>, transform_indices = @transform_13, window_bounds = array<i64: 1, 8>}, {transform_indices = @transform_14, window_bounds = array<i64: 1, 1>}, {transform_indices = @transform_15, window_bounds = array<i64: 1, 16, 128>}]} {
    %c0 = arith.constant 0 : index
    %c0_0 = arith.constant 0 : index
    %c0_1 = arith.constant 0 : index
    %0 = vector.load %arg1[%c0, %c0_0, %c0_1] : memref<1x8x128xf32, #tpu.memory_space<vmem>>, vector<1x8x128xf32>
    %1 = vector.shape_cast %0 : vector<1x8x128xf32> to vector<8x128xf32>
    %c0_2 = arith.constant 0 : index
    %c0_3 = arith.constant 0 : index
    %2 = vector.load %arg2[%c0_2, %c0_3] : memref<16x8xf32, #tpu.memory_space<vmem>>, vector<16x8xf32>
    %cst = arith.constant dense<0.000000e+00> : vector<16x128xf32>
    %3 = tpu.matmul %2, %1, %cst {dimension_numbers = #tpu.dot_dimension_numbers<[1], [0], [0], [1], [0, 0, 1, 1], [], []>} : vector<16x8xf32>, vector<8x128xf32>, vector<16x128xf32> -> vector<16x128xf32>
    %c0_4 = arith.constant 0 : index
    %c0_5 = arith.constant 0 : index
    %4 = vector.load %arg3[%c0_4, %c0_5] : memref<128x256xf32, #tpu.memory_space<vmem>>, vector<128x256xf32>
    %cst_6 = arith.constant dense<0.000000e+00> : vector<16x256xf32>
    %5 = tpu.matmul %3, %4, %cst_6 {dimension_numbers = #tpu.dot_dimension_numbers<[1], [0], [0], [1], [0, 0, 1, 1], [], []>} : vector<16x128xf32>, vector<128x256xf32>, vector<16x256xf32> -> vector<16x256xf32>
    %cst_7 = arith.constant 0.000000e+00 : f32
    %6 = vector.broadcast %cst_7 : f32 to vector<1x256xf32>
    %c0_8 = arith.constant 0 : index
    %c0_9 = arith.constant 0 : index
    %7 = vector.load %arg17[%c0_8, %c0_9] : memref<18x256xf32, #tpu.memory_space<vmem>>, vector<1x256xf32>
    tpu.vector_store %arg17[%c0_8, %c0_9], %6 {strides = array<i32>} : memref<18x256xf32, #tpu.memory_space<vmem>>, vector<1x256xf32>,
    %c17 = arith.constant 17 : index
    %c0_10 = arith.constant 0 : index
    %8 = vector.load %arg17[%c17, %c0_10] : memref<18x256xf32, #tpu.memory_space<vmem>>, vector<1x256xf32>
    tpu.vector_store %arg17[%c17, %c0_10], %6 {strides = array<i32>} : memref<18x256xf32, #tpu.memory_space<vmem>>, vector<1x256xf32>,
    %c1 = arith.constant 1 : index
    %c0_11 = arith.constant 0 : index
    %9 = vector.load %arg17[%c1, %c0_11] : memref<18x256xf32, #tpu.memory_space<vmem>>, vector<16x256xf32>
    tpu.vector_store %arg17[%c1, %c0_11], %5 {strides = array<i32>} : memref<18x256xf32, #tpu.memory_space<vmem>>, vector<16x256xf32>,
    %c1_12 = arith.constant 1 : index
    %c0_13 = arith.constant 0 : index
    %c0_14 = arith.constant 0 : index
    %10 = vector.load %arg4[%c1_12, %c0_13, %c0_14] : memref<3x256x128xf32, #tpu.memory_space<vmem>>, vector<1x256x128xf32>
    %11 = vector.shape_cast %10 : vector<1x256x128xf32> to vector<256x128xf32>
    %cst_15 = arith.constant dense<0.000000e+00> : vector<16x128xf32>
    %12 = tpu.matmul %5, %11, %cst_15 {dimension_numbers = #tpu.dot_dimension_numbers<[1], [0], [0], [1], [0, 0, 1, 1], [], []>} : vector<16x256xf32>, vector<256x128xf32>, vector<16x128xf32> -> vector<16x128xf32>
    %c0_16 = arith.constant 0 : index
    %c0_17 = arith.constant 0 : index
    %13 = vector.load %arg17[%c0_16, %c0_17] : memref<18x256xf32, #tpu.memory_space<vmem>>, vector<16x256xf32>
    %c0_18 = arith.constant 0 : index
    %c0_19 = arith.constant 0 : index
    %c0_20 = arith.constant 0 : index
    %14 = vector.load %arg4[%c0_18, %c0_19, %c0_20] : memref<3x256x128xf32, #tpu.memory_space<vmem>>, vector<1x256x128xf32>
    %15 = vector.shape_cast %14 : vector<1x256x128xf32> to vector<256x128xf32>
    %cst_21 = arith.constant dense<0.000000e+00> : vector<16x128xf32>
    %16 = tpu.matmul %13, %15, %cst_21 {dimension_numbers = #tpu.dot_dimension_numbers<[1], [0], [0], [1], [0, 0, 1, 1], [], []>} : vector<16x256xf32>, vector<256x128xf32>, vector<16x128xf32> -> vector<16x128xf32>
    %17 = arith.addf %12, %16 : vector<16x128xf32>
    %c2 = arith.constant 2 : index
    %c0_22 = arith.constant 0 : index
    %18 = vector.load %arg17[%c2, %c0_22] : memref<18x256xf32, #tpu.memory_space<vmem>>, vector<16x256xf32>
    %c2_23 = arith.constant 2 : index
    %c0_24 = arith.constant 0 : index
    %c0_25 = arith.constant 0 : index
    %19 = vector.load %arg4[%c2_23, %c0_24, %c0_25] : memref<3x256x128xf32, #tpu.memory_space<vmem>>, vector<1x256x128xf32>
    %20 = vector.shape_cast %19 : vector<1x256x128xf32> to vector<256x128xf32>
    %cst_26 = arith.constant dense<0.000000e+00> : vector<16x128xf32>
    %21 = tpu.matmul %18, %20, %cst_26 {dimension_numbers = #tpu.dot_dimension_numbers<[1], [0], [0], [1], [0, 0, 1, 1], [], []>} : vector<16x256xf32>, vector<256x128xf32>, vector<16x128xf32> -> vector<16x128xf32>
    %22 = arith.addf %17, %21 : vector<16x128xf32>
    %c0_27 = arith.constant 0 : index
    %c0_28 = arith.constant 0 : index
    %23 = vector.load %arg5[%c0_27, %c0_28] : memref<1x128xf32, #tpu.memory_space<vmem>>, vector<1x128xf32>
    %24 = vector.broadcast %23 : vector<1x128xf32> to vector<16x128xf32>
    %25 = arith.addf %22, %24 : vector<16x128xf32>
    %cst_29 = arith.constant 0.000000e+00 : f32
    %26 = vector.broadcast %cst_29 : f32 to vector<16x128xf32>
    %27 = arith.maximumf %25, %26 : vector<16x128xf32>
    %cst_30 = arith.constant 0.000000e+00 : f32
    %28 = vector.broadcast %cst_30 : f32 to vector<1x128xf32>
    %c0_31 = arith.constant 0 : index
    %c0_32 = arith.constant 0 : index
    %29 = vector.load %arg18[%c0_31, %c0_32] : memref<18x128xf32, #tpu.memory_space<vmem>>, vector<1x128xf32>
    tpu.vector_store %arg18[%c0_31, %c0_32], %28 {strides = array<i32>} : memref<18x128xf32, #tpu.memory_space<vmem>>, vector<1x128xf32>,
    %c17_33 = arith.constant 17 : index
    %c0_34 = arith.constant 0 : index
    %30 = vector.load %arg18[%c17_33, %c0_34] : memref<18x128xf32, #tpu.memory_space<vmem>>, vector<1x128xf32>
    tpu.vector_store %arg18[%c17_33, %c0_34], %28 {strides = array<i32>} : memref<18x128xf32, #tpu.memory_space<vmem>>, vector<1x128xf32>,
    %c1_35 = arith.constant 1 : index
    %c0_36 = arith.constant 0 : index
    %31 = vector.load %arg18[%c1_35, %c0_36] : memref<18x128xf32, #tpu.memory_space<vmem>>, vector<16x128xf32>
    tpu.vector_store %arg18[%c1_35, %c0_36], %27 {strides = array<i32>} : memref<18x128xf32, #tpu.memory_space<vmem>>, vector<16x128xf32>,
    %c1_37 = arith.constant 1 : index
    %c0_38 = arith.constant 0 : index
    %c0_39 = arith.constant 0 : index
    %32 = vector.load %arg6[%c1_37, %c0_38, %c0_39] : memref<3x128x128xf32, #tpu.memory_space<vmem>>, vector<1x128x128xf32>
    %33 = vector.shape_cast %32 : vector<1x128x128xf32> to vector<128x128xf32>
    %cst_40 = arith.constant dense<0.000000e+00> : vector<16x128xf32>
    %34 = tpu.matmul %27, %33, %cst_40 {dimension_numbers = #tpu.dot_dimension_numbers<[1], [0], [0], [1], [0, 0, 1, 1], [], []>} : vector<16x128xf32>, vector<128x128xf32>, vector<16x128xf32> -> vector<16x128xf32>
    %c0_41 = arith.constant 0 : index
    %c0_42 = arith.constant 0 : index
    %35 = vector.load %arg18[%c0_41, %c0_42] : memref<18x128xf32, #tpu.memory_space<vmem>>, vector<16x128xf32>
    %c0_43 = arith.constant 0 : index
    %c0_44 = arith.constant 0 : index
    %c0_45 = arith.constant 0 : index
    %36 = vector.load %arg6[%c0_43, %c0_44, %c0_45] : memref<3x128x128xf32, #tpu.memory_space<vmem>>, vector<1x128x128xf32>
    %37 = vector.shape_cast %36 : vector<1x128x128xf32> to vector<128x128xf32>
    %cst_46 = arith.constant dense<0.000000e+00> : vector<16x128xf32>
    %38 = tpu.matmul %35, %37, %cst_46 {dimension_numbers = #tpu.dot_dimension_numbers<[1], [0], [0], [1], [0, 0, 1, 1], [], []>} : vector<16x128xf32>, vector<128x128xf32>, vector<16x128xf32> -> vector<16x128xf32>
    %39 = arith.addf %34, %38 : vector<16x128xf32>
    %c2_47 = arith.constant 2 : index
    %c0_48 = arith.constant 0 : index
    %40 = vector.load %arg18[%c2_47, %c0_48] : memref<18x128xf32, #tpu.memory_space<vmem>>, vector<16x128xf32>
    %c2_49 = arith.constant 2 : index
    %c0_50 = arith.constant 0 : index
    %c0_51 = arith.constant 0 : index
    %41 = vector.load %arg6[%c2_49, %c0_50, %c0_51] : memref<3x128x128xf32, #tpu.memory_space<vmem>>, vector<1x128x128xf32>
    %42 = vector.shape_cast %41 : vector<1x128x128xf32> to vector<128x128xf32>
    %cst_52 = arith.constant dense<0.000000e+00> : vector<16x128xf32>
    %43 = tpu.matmul %40, %42, %cst_52 {dimension_numbers = #tpu.dot_dimension_numbers<[1], [0], [0], [1], [0, 0, 1, 1], [], []>} : vector<16x128xf32>, vector<128x128xf32>, vector<16x128xf32> -> vector<16x128xf32>
    %44 = arith.addf %39, %43 : vector<16x128xf32>
    %c0_53 = arith.constant 0 : index
    %c0_54 = arith.constant 0 : index
    %45 = vector.load %arg7[%c0_53, %c0_54] : memref<1x128xf32, #tpu.memory_space<vmem>>, vector<1x128xf32>
    %46 = vector.broadcast %45 : vector<1x128xf32> to vector<16x128xf32>
    %47 = arith.addf %44, %46 : vector<16x128xf32>
    %cst_55 = arith.constant 0.000000e+00 : f32
    %48 = vector.broadcast %cst_55 : f32 to vector<16x128xf32>
    %49 = arith.maximumf %47, %48 : vector<16x128xf32>
    %c0_56 = arith.constant 0 : index
    %c0_57 = arith.constant 0 : index
    %50 = vector.load %arg8[%c0_56, %c0_57] : memref<128x16xf32, #tpu.memory_space<vmem>>, vector<128x16xf32>
    %cst_58 = arith.constant dense<0.000000e+00> : vector<16x16xf32>
    %51 = tpu.matmul %49, %50, %cst_58 {dimension_numbers = #tpu.dot_dimension_numbers<[1], [0], [0], [1], [0, 0, 1, 1], [], []>} : vector<16x128xf32>, vector<128x16xf32>, vector<16x16xf32> -> vector<16x16xf32>
    %c0_59 = arith.constant 0 : index
    %c0_60 = arith.constant 0 : index
    %52 = memref.load %arg15[%c0_59, %c0_60] : memref<1x1xf32, #tpu.memory_space<smem>>
    %53 = vector.broadcast %52 : f32 to vector<16x16xf32>
    %54 = arith.addf %51, %53 : vector<16x16xf32>
    %55 = arith.negf %54 : vector<16x16xf32>
    %56 = math.exp %55 : vector<16x16xf32>
    %cst_61 = arith.constant 1.000000e+00 : f32
    %57 = vector.broadcast %cst_61 : f32 to vector<16x16xf32>
    %58 = arith.addf %57, %56 : vector<16x16xf32>
    %59 = arith.divf %57, %58 : vector<16x16xf32>
    %c0_62 = arith.constant 0 : index
    %c0_63 = arith.constant 0 : index
    %60 = vector.load %arg9[%c0_62, %c0_63] : memref<16x128xf32, #tpu.memory_space<vmem>>, vector<16x128xf32>
    %cst_64 = arith.constant dense<0.000000e+00> : vector<16x128xf32>
    %61 = tpu.matmul %59, %60, %cst_64 {dimension_numbers = #tpu.dot_dimension_numbers<[1], [0], [0], [1], [0, 0, 1, 1], [], []>} : vector<16x16xf32>, vector<16x128xf32>, vector<16x128xf32> -> vector<16x128xf32>
    %cst_65 = arith.constant dense<0xFF800000> : vector<128xf32>
    %62 = vector.multi_reduction <maximumf>, %49, %cst_65 [0] : vector<16x128xf32> to vector<128xf32>
    %63 = vector.shape_cast %62 : vector<128xf32> to vector<1x128xf32>
    %64 = vector.extract_strided_slice %63 {offsets = [0, 0], sizes = [1, 8], strides = [1, 1]} : vector<1x128xf32> to vector<1x8xf32>
    %65 = vector.extract_strided_slice %63 {offsets = [0, 8], sizes = [1, 8], strides = [1, 1]} : vector<1x128xf32> to vector<1x8xf32>
    %66 = arith.maximumf %64, %65 : vector<1x8xf32>
    %67 = vector.extract_strided_slice %63 {offsets = [0, 16], sizes = [1, 8], strides = [1, 1]} : vector<1x128xf32> to vector<1x8xf32>
    %68 = arith.maximumf %66, %67 : vector<1x8xf32>
    %69 = vector.extract_strided_slice %63 {offsets = [0, 24], sizes = [1, 8], strides = [1, 1]} : vector<1x128xf32> to vector<1x8xf32>
    %70 = arith.maximumf %68, %69 : vector<1x8xf32>
    %71 = vector.extract_strided_slice %63 {offsets = [0, 32], sizes = [1, 8], strides = [1, 1]} : vector<1x128xf32> to vector<1x8xf32>
    %72 = arith.maximumf %70, %71 : vector<1x8xf32>
    %73 = vector.extract_strided_slice %63 {offsets = [0, 40], sizes = [1, 8], strides = [1, 1]} : vector<1x128xf32> to vector<1x8xf32>
    %74 = arith.maximumf %72, %73 : vector<1x8xf32>
    %75 = vector.extract_strided_slice %63 {offsets = [0, 48], sizes = [1, 8], strides = [1, 1]} : vector<1x128xf32> to vector<1x8xf32>
    %76 = arith.maximumf %74, %75 : vector<1x8xf32>
    %77 = vector.extract_strided_slice %63 {offsets = [0, 56], sizes = [1, 8], strides = [1, 1]} : vector<1x128xf32> to vector<1x8xf32>
    %78 = arith.maximumf %76, %77 : vector<1x8xf32>
    %79 = vector.extract_strided_slice %63 {offsets = [0, 64], sizes = [1, 8], strides = [1, 1]} : vector<1x128xf32> to vector<1x8xf32>
    %80 = arith.maximumf %78, %79 : vector<1x8xf32>
    %81 = vector.extract_strided_slice %63 {offsets = [0, 72], sizes = [1, 8], strides = [1, 1]} : vector<1x128xf32> to vector<1x8xf32>
    %82 = arith.maximumf %80, %81 : vector<1x8xf32>
    %83 = vector.extract_strided_slice %63 {offsets = [0, 80], sizes = [1, 8], strides = [1, 1]} : vector<1x128xf32> to vector<1x8xf32>
    %84 = arith.maximumf %82, %83 : vector<1x8xf32>
    %85 = vector.extract_strided_slice %63 {offsets = [0, 88], sizes = [1, 8], strides = [1, 1]} : vector<1x128xf32> to vector<1x8xf32>
    %86 = arith.maximumf %84, %85 : vector<1x8xf32>
    %87 = vector.extract_strided_slice %63 {offsets = [0, 96], sizes = [1, 8], strides = [1, 1]} : vector<1x128xf32> to vector<1x8xf32>
    %88 = arith.maximumf %86, %87 : vector<1x8xf32>
    %89 = vector.extract_strided_slice %63 {offsets = [0, 104], sizes = [1, 8], strides = [1, 1]} : vector<1x128xf32> to vector<1x8xf32>
    %90 = arith.maximumf %88, %89 : vector<1x8xf32>
    %91 = vector.extract_strided_slice %63 {offsets = [0, 112], sizes = [1, 8], strides = [1, 1]} : vector<1x128xf32> to vector<1x8xf32>
    %92 = arith.maximumf %90, %91 : vector<1x8xf32>
    %93 = vector.extract_strided_slice %63 {offsets = [0, 120], sizes = [1, 8], strides = [1, 1]} : vector<1x128xf32> to vector<1x8xf32>
    %94 = arith.maximumf %92, %93 : vector<1x8xf32>
    %c0_66 = arith.constant 0 : index
    %c0_67 = arith.constant 0 : index
    %95 = vector.load %arg11[%c0_66, %c0_67] : memref<8x4xf32, #tpu.memory_space<vmem>>, vector<8x4xf32>
    %cst_68 = arith.constant dense<0.000000e+00> : vector<1x4xf32>
    %96 = tpu.matmul %94, %95, %cst_68 {dimension_numbers = #tpu.dot_dimension_numbers<[1], [0], [0], [1], [0, 0, 1, 1], [], []>} : vector<1x8xf32>, vector<8x4xf32>, vector<1x4xf32> -> vector<1x4xf32>
    %c0_69 = arith.constant 0 : index
    %c0_70 = arith.constant 0 : index
    %97 = vector.load %arg12[%c0_69, %c0_70] : memref<1x4xf32, #tpu.memory_space<vmem>>, vector<1x4xf32>
    %98 = arith.addf %96, %97 : vector<1x4xf32>
    %cst_71 = arith.constant 0.000000e+00 : f32
    %99 = vector.broadcast %cst_71 : f32 to vector<1x4xf32>
    %100 = arith.maximumf %98, %99 : vector<1x4xf32>
    %c0_72 = arith.constant 0 : index
    %c0_73 = arith.constant 0 : index
    %101 = vector.load %arg13[%c0_72, %c0_73] : memref<4x8xf32, #tpu.memory_space<vmem>>, vector<4x8xf32>
    %cst_74 = arith.constant dense<0.000000e+00> : vector<1x8xf32>
    %102 = tpu.matmul %100, %101, %cst_74 {dimension_numbers = #tpu.dot_dimension_numbers<[1], [0], [0], [1], [0, 0, 1, 1], [], []>} : vector<1x4xf32>, vector<4x8xf32>, vector<1x8xf32> -> vector<1x8xf32>
    %c0_75 = arith.constant 0 : index
    %c0_76 = arith.constant 0 : index
    %103 = vector.load %arg14[%c0_75, %c0_76] : memref<1x8xf32, #tpu.memory_space<vmem>>, vector<1x8xf32>
    %104 = arith.addf %102, %103 : vector<1x8xf32>
    %105 = arith.negf %104 : vector<1x8xf32>
    %106 = math.exp %105 : vector<1x8xf32>
    %cst_77 = arith.constant 1.000000e+00 : f32
    %107 = vector.broadcast %cst_77 : f32 to vector<1x8xf32>
    %108 = arith.addf %107, %106 : vector<1x8xf32>
    %109 = arith.divf %107, %108 : vector<1x8xf32>
    %c0_78 = arith.constant 0 : index
    %c0_79 = arith.constant 0 : index
    %110 = vector.load %arg10[%c0_78, %c0_79] : memref<8x128xf32, #tpu.memory_space<vmem>>, vector<8x128xf32>
    %cst_80 = arith.constant dense<0.000000e+00> : vector<1x128xf32>
    %111 = tpu.matmul %109, %110, %cst_80 {dimension_numbers = #tpu.dot_dimension_numbers<[1], [0], [0], [1], [0, 0, 1, 1], [], []>} : vector<1x8xf32>, vector<8x128xf32>, vector<1x128xf32> -> vector<1x128xf32>
    %112 = vector.broadcast %111 : vector<1x128xf32> to vector<16x128xf32>
    %113 = arith.addf %61, %112 : vector<16x128xf32>
    %114 = arith.mulf %113, %49 : vector<16x128xf32>
    %c0_81 = arith.constant 0 : index
    %c0_82 = arith.constant 0 : index
    %c0_83 = arith.constant 0 : index
    %115 = vector.load %arg16[%c0_81, %c0_82, %c0_83] : memref<1x16x128xf32, #tpu.memory_space<vmem>>, vector<1x16x128xf32>
    %116 = vector.shape_cast %115 : vector<1x16x128xf32> to vector<16x128xf32>
    %117 = vector.shape_cast %114 : vector<16x128xf32> to vector<1x16x128xf32>
    tpu.vector_store %arg16[%c0_81, %c0_82, %c0_83], %117 {strides = array<i32>} : memref<1x16x128xf32, #tpu.memory_space<vmem>>, vector<1x16x128xf32>,
    return
  }
  func.func @transform_0(%arg0: i32) -> (i32, i32, i32) {
    %c0_i32 = arith.constant 0 : i32
    %c0_i32_0 = arith.constant 0 : i32
    %c0_i32_1 = arith.constant 0 : i32
    return %arg0, %c0_i32, %c0_i32_0 : i32, i32, i32
  }
  func.func @transform_1(%arg0: i32) -> (i32, i32) {
    %c0_i32 = arith.constant 0 : i32
    %c0_i32_0 = arith.constant 0 : i32
    %c0_i32_1 = arith.constant 0 : i32
    return %c0_i32, %c0_i32_0 : i32, i32
  }
  func.func @transform_2(%arg0: i32) -> (i32, i32) {
    %c0_i32 = arith.constant 0 : i32
    %c0_i32_0 = arith.constant 0 : i32
    %c0_i32_1 = arith.constant 0 : i32
    return %c0_i32, %c0_i32_0 : i32, i32
  }
  func.func @transform_3(%arg0: i32) -> (i32, i32, i32) {
    %c0_i32 = arith.constant 0 : i32
    %c0_i32_0 = arith.constant 0 : i32
    %c0_i32_1 = arith.constant 0 : i32
    %c0_i32_2 = arith.constant 0 : i32
    return %c0_i32, %c0_i32_0, %c0_i32_1 : i32, i32, i32
  }
  func.func @transform_4(%arg0: i32) -> (i32, i32) {
    %c0_i32 = arith.constant 0 : i32
    %c0_i32_0 = arith.constant 0 : i32
    %c0_i32_1 = arith.constant 0 : i32
    return %c0_i32, %c0_i32_0 : i32, i32
  }
  func.func @transform_5(%arg0: i32) -> (i32, i32, i32) {
    %c0_i32 = arith.constant 0 : i32
    %c0_i32_0 = arith.constant 0 : i32
    %c0_i32_1 = arith.constant 0 : i32
    %c0_i32_2 = arith.constant 0 : i32
    return %c0_i32, %c0_i32_0, %c0_i32_1 : i32, i32, i32
  }
  func.func @transform_6(%arg0: i32) -> (i32, i32) {
    %c0_i32 = arith.constant 0 : i32
    %c0_i32_0 = arith.constant 0 : i32
    %c0_i32_1 = arith.constant 0 : i32
    return %c0_i32, %c0_i32_0 : i32, i32
  }
  func.func @transform_7(%arg0: i32) -> (i32, i32) {
    %c0_i32 = arith.constant 0 : i32
    %c0_i32_0 = arith.constant 0 : i32
    %c0_i32_1 = arith.constant 0 : i32
    return %c0_i32, %c0_i32_0 : i32, i32
  }
  func.func @transform_8(%arg0: i32) -> (i32, i32) {
    %c0_i32 = arith.constant 0 : i32
    %c0_i32_0 = arith.constant 0 : i32
    %c0_i32_1 = arith.constant 0 : i32
    return %c0_i32, %c0_i32_0 : i32, i32
  }
  func.func @transform_9(%arg0: i32) -> (i32, i32) {
    %c0_i32 = arith.constant 0 : i32
    %c0_i32_0 = arith.constant 0 : i32
    %c0_i32_1 = arith.constant 0 : i32
    return %c0_i32, %c0_i32_0 : i32, i32
  }
  func.func @transform_10(%arg0: i32) -> (i32, i32) {
    %c0_i32 = arith.constant 0 : i32
    %c0_i32_0 = arith.constant 0 : i32
    %c0_i32_1 = arith.constant 0 : i32
    return %c0_i32, %c0_i32_0 : i32, i32
  }
  func.func @transform_11(%arg0: i32) -> (i32, i32) {
    %c0_i32 = arith.constant 0 : i32
    %c0_i32_0 = arith.constant 0 : i32
    %c0_i32_1 = arith.constant 0 : i32
    return %c0_i32, %c0_i32_0 : i32, i32
  }
  func.func @transform_12(%arg0: i32) -> (i32, i32) {
    %c0_i32 = arith.constant 0 : i32
    %c0_i32_0 = arith.constant 0 : i32
    %c0_i32_1 = arith.constant 0 : i32
    return %c0_i32, %c0_i32_0 : i32, i32
  }
  func.func @transform_13(%arg0: i32) -> (i32, i32) {
    %c0_i32 = arith.constant 0 : i32
    %c0_i32_0 = arith.constant 0 : i32
    %c0_i32_1 = arith.constant 0 : i32
    return %c0_i32, %c0_i32_0 : i32, i32
  }
  func.func @transform_14(%arg0: i32) -> (i32, i32) {
    %c0_i32 = arith.constant 0 : i32
    %c0_i32_0 = arith.constant 0 : i32
    %c0_i32_1 = arith.constant 0 : i32
    return %c0_i32, %c0_i32_0 : i32, i32
  }
  func.func @transform_15(%arg0: i32) -> (i32, i32, i32) {
    %c0_i32 = arith.constant 0 : i32
    %c0_i32_0 = arith.constant 0 : i32
    %c0_i32_1 = arith.constant 0 : i32
    return %arg0, %c0_i32, %c0_i32_0 : i32, i32, i32
  }
}

</mosaic_0001>

<bundles_post_ra>
// kernel: tile.14
= control target key start
LH: loop header
LB: loop body
LE: loop exit
PB: predicated region body
PF: predicated region fallthrough
CT: control target
= control target key end

     0   :  { %s131_s10 = smov 120   ;;  %s132_s11 = smov 104   ;;  %vm3_vm0 = vcmask 64512   ;;  %vm9_vm1 = vcmask 1048512   ;;  %vm15_vm2 = vcmask 982912   ;;  %vm21_vm3 = vcmask 917312   ;;  %s207_s0 = inlined_call_operand.vmem [shape: f32[16,8], index: 0, kind: input, shape index: {}]   ;;  %s208_s1 = inlined_call_operand.vmem [shape: f32[1,128], index: 1, kind: output, shape index: {}]  }
   0x1   :  { %v101_v0 = vld [vmem:[%s207_s0 + $0xf] sm:$0x1]   ;;  %v103_v1 = vld [vmem:[%s207_s0 + $0xd] sm:$0x1]   ;;  %v105_v2 = vld [vmem:[%s207_s0 + $0xb] sm:$0x1]  }
   0x2   :  { %7 = vrot.lane.b32.xlu0 %v101_v0, %s131_s10  ;;  %19 = vrot.lane.b32.xlu1 %v103_v1, %s132_s11  ;;  %s133_s14 = smov 88   ;;  %v102_v3 = vld [vmem:[%s207_s0 + $0xe] sm:$0x1]   ;;  %v104_v4 = vld [vmem:[%s207_s0 + $0xc] sm:$0x1]   ;;  %s134_s19 = smov 112  }
   0x3   :  { %31 = vrot.lane.b32.xlu2 %v105_v2, %s133_s14  ;;  %s135_s20 = smov 96   ;;  %v106_v5 = vld [vmem:[%s207_s0 + $0xa] sm:$0x1]   ;;  %s136_s23 = smov 80   ;;  %v107_v6 = vld [vmem:[%s207_s0 + $0x9] sm:$0x1]  }
   0x4   :  { %v108_v7 = vld [vmem:[%s207_s0 + $0x8] sm:$0x1]   ;;  %s137_s28 = smov 72   ;;  %s138_s29 = smov 64   ;;  %v109_v8 = vld [vmem:[%s207_s0 + $0x7] sm:$0x1]  }
   0x5   :  { %s139_s3 = smov 56   ;;  %v110_v9 = vld [vmem:[%s207_s0 + $0x6] sm:$0x1]   ;;  %v111_v10 = vld [vmem:[%s207_s0 + $0x5] sm:$0x1]   ;;  %s140_s8 = smov 48  }
   0x6   :  { %s141_s9 = smov 40   ;;  %v112_v11 = vld [vmem:[%s207_s0 + $0x4] sm:$0x1]   ;;  %s142_s12 = smov 32   ;;  %v113_v12 = vld [vmem:[%s207_s0 + $0x3] sm:$0x1]  }
   0x7   :  { %v114_v13 = vld [vmem:[%s207_s0 + $0x2] sm:$0x1]   ;;  %s143_s17 = smov 24   ;;  %s144_s18 = smov 16   ;;  %v115_v14 = vld [vmem:[%s207_s0 + $0x1] sm:$0x1]  }
   0x8   :  { %s145_s21 = smov 8   ;;  %v2_v15 = vld [vmem:[%s207_s0] sm:$0x1]   ;;  %vm27_vm4 = vcmask 851712   ;;  %vm33_vm5 = vcmask 786112   ;;  %vm39_vm6 = vcmask 720512  }
   0x9   :  { %4 = vst.msk [vmem:[#allocation0] sm:$0x1] %vm3_vm0, %v2_v15   ;;  %vm45_vm7 = vcmask 654912   ;;  %vm51_vm8 = vcmask 589312   ;;  %vm57_vm9 = vcmask 523712   ;;  %vm63_vm10 = vcmask 458112  }
   0xa   :  { %13 = vrot.lane.b32.xlu0 %v102_v3, %s134_s19  ;;  %25 = vrot.lane.b32.xlu1 %v104_v4, %s135_s20  ;;  %vm69_vm11 = vcmask 392512   ;;  %vm75_vm12 = vcmask 326912   ;;  %vm81_vm13 = vcmask 261312   ;;  %vm87_vm14 = vcmask 195712  }
   0xb   :  { %37 = vrot.lane.b32.xlu2 %v106_v5, %s136_s23  ;;  %vm93_vm15 = vcmask 130112  }
  0x12   :  { %43 = vrot.lane.b32.xlu0 %v107_v6, %s137_s28  ;;  %49 = vrot.lane.b32.xlu1 %v108_v7, %s138_s29 }
  0x13   :  { %55 = vrot.lane.b32.xlu2 %v109_v8, %s139_s3 }
  0x1a   :  { %61 = vrot.lane.b32.xlu0 %v110_v9, %s140_s8  ;;  %67 = vrot.lane.b32.xlu1 %v111_v10, %s141_s9 }
  0x1b   :  { %73 = vrot.lane.b32.xlu2 %v112_v11, %s142_s12 }
  0x22   :  { %79 = vrot.lane.b32.xlu0 %v113_v12, %s143_s17  ;;  %85 = vrot.lane.b32.xlu1 %v114_v13, %s144_s18 }
  0x23   :  { %91 = vrot.lane.b32.xlu2 %v115_v14, %s145_s21 }
  0x5d   :  { %v32_v16 = vpop.permute.xlu2 %31  }
  0x65   :  { %v38_v17 = vpop.permute.xlu2 %37  }
  0x6d   :  { %v56_v18 = vpop.permute.xlu2 %55  }
  0x74   :  { %v8_v19 = vpop.permute.xlu0 %7   ;;  %v20_v20 = vpop.permute.xlu1 %19  }
  0x75   :  { %10 = vst.msk [vmem:[#allocation0] sm:$0x1] %vm9_vm1, %v8_v19   ;;  %v74_v21 = vpop.permute.xlu2 %73  }
  0x7c   :  { %v14_v22 = vpop.permute.xlu0 %13   ;;  %v26_v23 = vpop.permute.xlu1 %25  }
  0x7d   :  { %16 = vst.msk [vmem:[#allocation0] sm:$0x1] %vm15_vm2, %v14_v22   ;;  %v92_v24 = vpop.permute.xlu2 %91  }
  0x7e   :  { %22 = vst.msk [vmem:[#allocation0] sm:$0x1] %vm21_vm3, %v20_v20  }
  0x7f   :  { %28 = vst.msk [vmem:[#allocation0] sm:$0x1] %vm27_vm4, %v26_v23  }
  0x80   :  { %34 = vst.msk [vmem:[#allocation0] sm:$0x1] %vm33_vm5, %v32_v16  }
  0x81   :  { %40 = vst.msk [vmem:[#allocation0] sm:$0x1] %vm39_vm6, %v38_v17  }
  0x84   :  { %v44_v25 = vpop.permute.xlu0 %43   ;;  %v50_v26 = vpop.permute.xlu1 %49  }
  0x85   :  { %46 = vst.msk [vmem:[#allocation0] sm:$0x1] %vm45_vm7, %v44_v25  }
  0x86   :  { %52 = vst.msk [vmem:[#allocation0] sm:$0x1] %vm51_vm8, %v50_v26  }
  0x87   :  { %58 = vst.msk [vmem:[#allocation0] sm:$0x1] %vm57_vm9, %v56_v18  }
  0x8c   :  { %v62_v27 = vpop.permute.xlu0 %61   ;;  %v68_v28 = vpop.permute.xlu1 %67  }
  0x8d   :  { %64 = vst.msk [vmem:[#allocation0] sm:$0x1] %vm63_vm10, %v62_v27  }
  0x8e   :  { %70 = vst.msk [vmem:[#allocation0] sm:$0x1] %vm69_vm11, %v68_v28  }
  0x8f   :  { %76 = vst.msk [vmem:[#allocation0] sm:$0x1] %vm75_vm12, %v74_v21  }
  0x94   :  { %v80_v29 = vpop.permute.xlu0 %79   ;;  %v86_v30 = vpop.permute.xlu1 %85  }
  0x95   :  { %82 = vst.msk [vmem:[#allocation0] sm:$0x1] %vm81_vm13, %v80_v29  }
  0x96   :  { %88 = vst.msk [vmem:[#allocation0] sm:$0x1] %vm87_vm14, %v86_v30  }
  0x97   :  { %94 = vst.msk [vmem:[#allocation0] sm:$0x1] %vm93_vm15, %v92_v24  }
  0x9e   :  { %v97_v31 = vld [vmem:[#allocation0] sm:$0x1] }
  0x9f   :  { %100 = vst [vmem:[%s208_s1] sm:$0x1] %v97_v31 }

// kernel: decoder_forward.1
= control target key start
LH: loop header
LB: loop body
LE: loop exit
PB: predicated region body
PF: predicated region fallthrough
CT: control target
= control target key end

     0   :  { %s1651_s20 = smov 0   ;;  %s2297_s0 = inlined_call_operand.vmem [shape: f32[2,8,128], index: 0, kind: input, shape index: {}]   ;;  %s2298_s1 = inlined_call_operand.vmem [shape: f32[16,8], index: 1, kind: input, shape index: {}]   ;;  %s2299_s2 = inlined_call_operand.vmem [shape: f32[128,256], index: 2, kind: input, shape index: {}]   ;;  %s2300_s3 = inlined_call_operand.vmem [shape: f32[3,256,128], index: 3, kind: input, shape index: {}]   ;;  %s2301_s4 = inlined_call_operand.vmem [shape: f32[1,128], index: 4, kind: input, shape index: {}]   ;;  %s2302_s5 = inlined_call_operand.vmem [shape: f32[3,128,128], index: 5, kind: input, shape index: {}]   ;;  %s2303_s6 = inlined_call_operand.vmem [shape: f32[1,128], index: 6, kind: input, shape index: {}]   ;;  %s2304_s7 = inlined_call_operand.vmem [shape: f32[128,16], index: 7, kind: input, shape index: {}]   ;;  %s2305_s8 = inlined_call_operand.vmem [shape: f32[16,128], index: 8, kind: input, shape index: {}]   ;;  %s2306_s9 = inlined_call_operand.vmem [shape: f32[8,128], index: 9, kind: input, shape index: {}]   ;;  %s2307_s10 = inlined_call_operand.vmem [shape: f32[8,4], index: 10, kind: input, shape index: {}]   ;;  %s2308_s11 = inlined_call_operand.vmem [shape: f32[1,4], index: 11, kind: input, shape index: {}]   ;;  %s2309_s12 = inlined_call_operand.vmem [shape: f32[4,8], index: 12, kind: input, shape index: {}]   ;;  %s2310_s13 = inlined_call_operand.vmem [shape: f32[1,8], index: 13, kind: input, shape index: {}]   ;;  %s2311_s14 = inlined_call_operand.<no memory space> [shape: f32[1,1], index: 14, kind: input, shape index: {}]   ;;  %s2312_s15 = inlined_call_operand.vmem [shape: f32[2,16,128], index: 15, kind: output, shape index: {}]  }
   0x1   :  { %20 = sst [smem:[#allocation4]] %s2311_s14 }
   0x2 LB: > { %s1388_s21 = sadd.s32 4294967295, %s1550_s20   ;;  %p1392_p0 = scmp.ge.s32.totalorder %s1550_s20, 1  ;;  %s1550_s20 = sphi %s1651_s20, %s26_s20  }
   0x3   : > { %p437_p1 = scmp.lt.s32.totalorder %s1550_s20, 3 }
   0x5   : > { %p438_p2 = pnand %p1392_p0, %p437_p1 }
   0x6   : > { %p484_p3 = scmp.lt.s32.totalorder (!%p438_p2), %s1388_s21, 1  ;;  %s1553_s25 = smov (!%p438_p2), 88  }
   0x7   : > { %441 = sbr.rel (%p438_p2) target bundleno = 1198 (0x4ae), region = 80  ;;  %s1554_s26 = smov (!%p438_p2), 104  }
   0x8   : > { %s1556_s28 = smov (!%p438_p2), 80   ;;  %s1557_s29 = smov (!%p438_p2), 96  }
   0x9   : > { %s1559_s16 = smov (!%p438_p2), 56   ;;  %s1560_s17 = smov (!%p438_p2), 64  }
   0xa   : > { %s1561_s18 = smov (!%p438_p2), 72   ;;  %s1562_s19 = smov (!%p438_p2), 32  }
   0xb   : > { %s1563_s22 = smov (!%p438_p2), 40   ;;  %s1564_s23 = smov (!%p438_p2), 48  }
   0xc   : > { %v557_v0 = vld [vmem:[%s2299_s2 + $0xf8] sm:$0xff]  ;;  %v555_v1 = vld [vmem:[%s2299_s2 + $0xe8] sm:$0xff]  ;;  %s2314_s21 = smov (!%p484_p3, %s1388_s21), 1  ;;  %v494_v3 = vld [vmem:[%s2298_s1] sm:$0xff]  ;;  %vm496_vm0 = vcmask 64512   ;;  %vm617_vm2 = vcmask 1040384  }
   0xd   : > { %581 = vmatpush.msra.mxu2 %v557_v0  ;;  %v553_v2 = vld [vmem:[%s2299_s2 + $0xd8] sm:$0xff]  ;;  %s1393_s27 = sshll.u32 %s2314_s21, 3  ;;  %v551_v4 = vld [vmem:[%s2299_s2 + $0xc8] sm:$0xff]  ;;  %v556_v6 = vld [vmem:[%s2299_s2 + $0xf0] sm:$0xff]  ;;  %vm842_vm3 = vcmask 1045504   ;;  %s1565_s14 = smov 8  }
   0xe   : > { %s487_s30 = scalar_lea.vmem %s2297_s0, %s1393_s27  ;;  %v549_v7 = vld [vmem:[%s2299_s2 + $0xb8] sm:$0xff]  ;;  %v554_v8 = vld [vmem:[%s2299_s2 + $0xe0] sm:$0xff]  ;;  %v547_v9 = vld [vmem:[%s2299_s2 + $0xa8] sm:$0xff]  ;;  %s1555_s27 = smov 120   ;;  %vm1299_vm7 = vcmask 130048   ;;  %vm1231_vm13 = vcmask 1043456  }
   0xf   : > { %582 = vmatpush.msra.mxu2 %v555_v1  ;;  %v493_v5 = vld [vmem:[%s487_s30] sm:$0xff]  ;;  %v552_v10 = vld [vmem:[%s2299_s2 + $0xd0] sm:$0xff]  ;;  %v545_v11 = vld [vmem:[%s2299_s2 + $0x98] sm:$0xff]  ;;  %s1558_s30 = smov 112   ;;  %s1566_s24 = smov 16   ;;  %vm1227_vm14 = vcmask 31744  }
  0x10   : > { %518 = vmatpush.msra.mxu1 %v493_v5  ;;  %v550_v12 = vld [vmem:[%s2299_s2 + $0xc0] sm:$0xff]  ;;  %v495_v13 = vld [vmem:[%s2298_s1 + $0x8] sm:$0xff]  ;;  %v548_v15 = vld [vmem:[%s2299_s2 + $0xb0] sm:$0xff] }
  0x11   : > { %583 = vmatpush.msra.mxu2 %v553_v2  ;;  %1396 = vmatmul.msk.f32.vlgmr.msra.gmra.mxu1 %vm496_vm0, %v494_v3  ;;  %v543_v14 = vld [vmem:[%s2299_s2 + $0x88] sm:$0xff]  ;;  %v541_v16 = vld [vmem:[%s2299_s2 + $0x78] sm:$0xff]  ;;  %v546_v17 = vld [vmem:[%s2299_s2 + $0xa0] sm:$0xff] }
  0x12   : > { %558 = vmatpush.msrb.mxu1 %v556_v6  ;;  %v539_v18 = vld [vmem:[%s2299_s2 + $0x68] sm:$0xff]  ;;  %v544_v19 = vld [vmem:[%s2299_s2 + $0x90] sm:$0xff]  ;;  %v537_v20 = vld [vmem:[%s2299_s2 + $0x58] sm:$0xff] }
  0x13   : > { %584 = vmatpush.msra.mxu2 %v551_v4  ;;  %v542_v21 = vld [vmem:[%s2299_s2 + $0x80] sm:$0xff]  ;;  %v535_v22 = vld [vmem:[%s2299_s2 + $0x48] sm:$0xff]  ;;  %v540_v23 = vld [vmem:[%s2299_s2 + $0x70] sm:$0xff] }
  0x14   : > { %559 = vmatpush.msrb.mxu1 %v554_v8  ;;  %v533_v24 = vld [vmem:[%s2299_s2 + $0x38] sm:$0xff]  ;;  %v538_v25 = vld [vmem:[%s2299_s2 + $0x60] sm:$0xff]  ;;  %v531_v26 = vld [vmem:[%s2299_s2 + $0x28] sm:$0xff] }
  0x15   : > { %585 = vmatpush.msra.mxu2 %v549_v7  ;;  %v536_v27 = vld [vmem:[%s2299_s2 + $0x50] sm:$0xff]  ;;  %v529_v28 = vld [vmem:[%s2299_s2 + $0x18] sm:$0xff]  ;;  %v534_v29 = vld [vmem:[%s2299_s2 + $0x40] sm:$0xff] }
  0x16   : > { %560 = vmatpush.msrb.mxu1 %v552_v10  ;;  %v532_v30 = vld [vmem:[%s2299_s2 + $0x30] sm:$0xff]  ;;  %v530_v31 = vld [vmem:[%s2299_s2 + $0x20] sm:$0xff]  ;;  %v527_v34 = vld [vmem:[%s2299_s2 + $0x8] sm:$0xff] }
  0x17   : > { %586 = vmatpush.msra.mxu2 %v547_v9  ;;  %v528_v32 = vld [vmem:[%s2299_s2 + $0x10] sm:$0xff]  ;;  %v526_v33 = vld [vmem:[%s2299_s2] sm:$0xff]  ;;  %v688_v35 = vld [vmem:[%s2300_s3 + $0x78] sm:$0xff] }
  0x18   : > { %561 = vmatpush.msrb.mxu1 %v550_v12  ;;  %v687_v36 = vld [vmem:[%s2300_s3 + $0x70] sm:$0xff]  ;;  %705 = vmatpush.msra.mxu3 %v688_v35  ;;  %v1413_v37 = vld [vmem:[%s2300_s3 + $0x178] sm:$0xff]  ;;  %v686_v39 = vld [vmem:[%s2300_s3 + $0x68] sm:$0xff] }
  0x19   : > { %587 = vmatpush.msra.mxu2 %v545_v11  ;;  %1397 = vmatmul.msk.f32.gmra.mxu1 %vm496_vm0, %v495_v13  ;;  %v704_v38 = vld [vmem:[%s2300_s3 + $0xf8] sm:$0xff]  ;;  %v1412_v40 = vld [vmem:[%s2300_s3 + $0x170] sm:$0xff]  ;;  %v1411_v42 = vld [vmem:[%s2300_s3 + $0x168] sm:$0xff] }
  0x1a   : > { %562 = vmatpush.msrb.mxu1 %v548_v15  ;;  %728 = vmatpush.msra.mxu0 %v704_v38  ;;  %v703_v41 = vld [vmem:[%s2300_s3 + $0xf0] sm:$0xff]  ;;  %v702_v43 = vld [vmem:[%s2300_s3 + $0xe8] sm:$0xff]  ;;  %v685_v44 = vld [vmem:[%s2300_s3 + $0x60] sm:$0xff] }
  0x1b   : > { %588 = vmatpush.msra.mxu2 %v543_v14  ;;  %706 = vmatpush.msra.mxu3 %v687_v36  ;;  %v1429_v45 = vld [vmem:[%s2300_s3 + $0x1f8] sm:$0xff]  ;;  %v1410_v46 = vld [vmem:[%s2300_s3 + $0x160] sm:$0xff]  ;;  %v1428_v48 = vld [vmem:[%s2300_s3 + $0x1f0] sm:$0xff] }
  0x1c   : > { %563 = vmatpush.msrb.mxu1 %v546_v17  ;;  %729 = vmatpush.msra.mxu0 %v703_v41  ;;  %v701_v47 = vld [vmem:[%s2300_s3 + $0xe0] sm:$0xff]  ;;  %v684_v49 = vld [vmem:[%s2300_s3 + $0x58] sm:$0xff]  ;;  %v1427_v52 = vld [vmem:[%s2300_s3 + $0x1e8] sm:$0xff] }
  0x1d   : > { %589 = vmatpush.msra.mxu2 %v541_v16  ;;  %707 = vmatpush.msra.mxu3 %v686_v39  ;;  %v1409_v50 = vld [vmem:[%s2300_s3 + $0x158] sm:$0xff]  ;;  %v683_v53 = vld [vmem:[%s2300_s3 + $0x50] sm:$0xff]  ;;  %v1426_v54 = vld [vmem:[%s2300_s3 + $0x1e0] sm:$0xff] }
  0x1e   : > { %564 = vmatpush.msrb.mxu1 %v544_v19  ;;  %730 = vmatpush.msra.mxu0 %v702_v43  ;;  %v700_v51 = vld [vmem:[%s2300_s3 + $0xd8] sm:$0xff]  ;;  %v1408_v55 = vld [vmem:[%s2300_s3 + $0x150] sm:$0xff]  ;;  %v682_v57 = vld [vmem:[%s2300_s3 + $0x48] sm:$0xff] }
  0x1f   : > { %590 = vmatpush.msra.mxu2 %v539_v18  ;;  %708 = vmatpush.msra.mxu3 %v685_v44  ;;  %v699_v56 = vld [vmem:[%s2300_s3 + $0xd0] sm:$0xff]  ;;  %v1425_v58 = vld [vmem:[%s2300_s3 + $0x1d8] sm:$0xff]  ;;  %v1407_v59 = vld [vmem:[%s2300_s3 + $0x148] sm:$0xff]  ;;  %v1552_v44 = vmov 0.0  }
  0x20   : > { %565 = vmatpush.msrb.mxu1 %v542_v21  ;;  %731 = vmatpush.msra.mxu0 %v701_v47  ;;  %v698_v60 = vld [vmem:[%s2300_s3 + $0xc8] sm:$0xff]  ;;  %v681_v61 = vld [vmem:[%s2300_s3 + $0x40] sm:$0xff]  ;;  %v1424_v62 = vld [vmem:[%s2300_s3 + $0x1d0] sm:$0xff]  ;;  %913 = vst [vmem:[#allocation3] sm:$0x1] %v1552_v44 }
  0x21   : > { %591 = vmatpush.msra.mxu2 %v537_v20  ;;  %709 = vmatpush.msra.mxu3 %v684_v49  ;;  %v1406_v63 = vld [vmem:[%s2300_s3 + $0x140] sm:$0xff]  ;;  %v680_v1 = vld [vmem:[%s2300_s3 + $0x38] sm:$0xff]  ;;  %v1423_v2 = vld [vmem:[%s2300_s3 + $0x1c8] sm:$0xff]  ;;  %914 = vst [vmem:[#allocation3 + $0x11] sm:$0x1] %v1552_v44 }
  0x22   : > { %566 = vmatpush.msrb.mxu1 %v540_v23  ;;  %732 = vmatpush.msra.mxu0 %v700_v51  ;;  %v697_v0 = vld [vmem:[%s2300_s3 + $0xc0] sm:$0xff]  ;;  %v1405_v3 = vld [vmem:[%s2300_s3 + $0x138] sm:$0xff]  ;;  %v679_v5 = vld [vmem:[%s2300_s3 + $0x30] sm:$0xff] }
  0x23   : > { %592 = vmatpush.msra.mxu2 %v535_v22  ;;  %710 = vmatpush.msra.mxu3 %v683_v53  ;;  %v696_v4 = vld [vmem:[%s2300_s3 + $0xb8] sm:$0xff]  ;;  %v1422_v6 = vld [vmem:[%s2300_s3 + $0x1c0] sm:$0xff]  ;;  %v1404_v7 = vld [vmem:[%s2300_s3 + $0x130] sm:$0xff] }
  0x24   : > { %567 = vmatpush.msrb.mxu1 %v538_v25  ;;  %733 = vmatpush.msra.mxu0 %v699_v56  ;;  %v695_v8 = vld [vmem:[%s2300_s3 + $0xb0] sm:$0xff]  ;;  %v678_v9 = vld [vmem:[%s2300_s3 + $0x28] sm:$0xff]  ;;  %v1421_v10 = vld [vmem:[%s2300_s3 + $0x1b8] sm:$0xff] }
  0x25   : > { %593 = vmatpush.msra.mxu2 %v533_v24  ;;  %711 = vmatpush.msra.mxu3 %v682_v57  ;;  %v1403_v11 = vld [vmem:[%s2300_s3 + $0x128] sm:$0xff]  ;;  %v677_v13 = vld [vmem:[%s2300_s3 + $0x20] sm:$0xff]  ;;  %v1420_v14 = vld [vmem:[%s2300_s3 + $0x1b0] sm:$0xff] }
  0x26   : > { %568 = vmatpush.msrb.mxu1 %v536_v27  ;;  %734 = vmatpush.msra.mxu0 %v698_v60  ;;  %v694_v12 = vld [vmem:[%s2300_s3 + $0xa8] sm:$0xff]  ;;  %v676_v15 = vld [vmem:[%s2300_s3 + $0x18] sm:$0xff]  ;;  %v1402_v16 = vld [vmem:[%s2300_s3 + $0x120] sm:$0xff] }
  0x27   : > { %594 = vmatpush.msra.mxu2 %v531_v26  ;;  %712 = vmatpush.msra.mxu3 %v681_v61  ;;  %v693_v18 = vld [vmem:[%s2300_s3 + $0xa0] sm:$0xff]  ;;  %v1419_v19 = vld [vmem:[%s2300_s3 + $0x1a8] sm:$0xff]  ;;  %v675_v20 = vld [vmem:[%s2300_s3 + $0x10] sm:$0xff] }
  0x28   : > { %569 = vmatpush.msrb.mxu1 %v534_v29  ;;  %735 = vmatpush.msra.mxu0 %v697_v0  ;;  %v1401_v21 = vld [vmem:[%s2300_s3 + $0x118] sm:$0xff]  ;;  %v1418_v23 = vld [vmem:[%s2300_s3 + $0x1a0] sm:$0xff]  ;;  %v674_v24 = vld [vmem:[%s2300_s3 + $0x8] sm:$0xff] }
  0x29   : > { %595 = vmatpush.msra.mxu2 %v529_v28  ;;  %713 = vmatpush.msra.mxu3 %v680_v1  ;;  %v692_v22 = vld [vmem:[%s2300_s3 + $0x98] sm:$0xff]  ;;  %v1400_v25 = vld [vmem:[%s2300_s3 + $0x110] sm:$0xff]  ;;  %v673_v27 = vld [vmem:[%s2300_s3] sm:$0xff] }
  0x2a   : > { %570 = vmatpush.msrb.mxu1 %v532_v30  ;;  %736 = vmatpush.msra.mxu0 %v696_v4  ;;  %v691_v26 = vld [vmem:[%s2300_s3 + $0x90] sm:$0xff]  ;;  %v1399_v28 = vld [vmem:[%s2300_s3 + $0x108] sm:$0xff]  ;;  %v1445_v29 = vld [vmem:[%s2300_s3 + $0x278] sm:$0xff] }
  0x2b   : > { %596 = vmatpush.msra.mxu2 %v527_v34  ;;  %714 = vmatpush.msra.mxu3 %v679_v5  ;;  %v1417_v34 = vld [vmem:[%s2300_s3 + $0x198] sm:$0xff]  ;;  %v1443_v35 = vld [vmem:[%s2300_s3 + $0x268] sm:$0xff]  ;;  %v689_v36 = vld [vmem:[%s2300_s3 + $0x80] sm:$0xff] }
  0x2c   : > { %571 = vmatpush.msrb.mxu1 %v530_v31  ;;  %737 = vmatpush.msra.mxu0 %v695_v8  ;;  %v1444_v31 = vld [vmem:[%s2300_s3 + $0x270] sm:$0xff]  ;;  %v1442_v39 = vld [vmem:[%s2300_s3 + $0x260] sm:$0xff]  ;;  %v1415_v41 = vld [vmem:[%s2300_s3 + $0x188] sm:$0xff] }
  0x2d   : > { %774 = vmatpush.msrb.mxu2 %v1429_v45  ;;  %715 = vmatpush.msra.mxu3 %v678_v9  ;;  %v1416_v38 = vld [vmem:[%s2300_s3 + $0x190] sm:$0xff]  ;;  %v1414_v45 = vld [vmem:[%s2300_s3 + $0x180] sm:$0xff]  ;;  %v1459_v47 = vld [vmem:[%s2300_s3 + $0x2e8] sm:$0xff] }
  0x2e   : > { %572 = vmatpush.msrb.mxu1 %v528_v32  ;;  %738 = vmatpush.msra.mxu0 %v694_v12  ;;  %v690_v32 = vld [vmem:[%s2300_s3 + $0x88] sm:$0xff]  ;;  %v1460_v43 = vld [vmem:[%s2300_s3 + $0x2f0] sm:$0xff]  ;;  %v1458_v49 = vld [vmem:[%s2300_s3 + $0x2e0] sm:$0xff] }
  0x2f   : > { %775 = vmatpush.msrb.mxu2 %v1428_v48  ;;  %716 = vmatpush.msra.mxu3 %v677_v13  ;;  %v1439_v48 = vld [vmem:[%s2300_s3 + $0x248] sm:$0xff]  ;;  %v1457_v51 = vld [vmem:[%s2300_s3 + $0x2d8] sm:$0xff]  ;;  %v1456_v53 = vld [vmem:[%s2300_s3 + $0x2d0] sm:$0xff] }
  0x30   : > { %573 = vmatpush.msrb.mxu1 %v526_v33  ;;  %739 = vmatpush.msra.mxu0 %v693_v18  ;;  %v1398_v33 = vld [vmem:[%s2300_s3 + $0x100] sm:$0xff]  ;;  %v1435_v56 = vld [vmem:[%s2300_s3 + $0x228] sm:$0xff]  ;;  %v1433_v60 = vld [vmem:[%s2300_s3 + $0x218] sm:$0xff] }
  0x31   : > { %776 = vmatpush.msrb.mxu2 %v1427_v52  ;;  %717 = vmatpush.msra.mxu3 %v676_v15  ;;  %v1437_v52 = vld [vmem:[%s2300_s3 + $0x238] sm:$0xff]  ;;  %v1454_v57 = vld [vmem:[%s2300_s3 + $0x2c0] sm:$0xff]  ;;  %v1452_v61 = vld [vmem:[%s2300_s3 + $0x2b0] sm:$0xff] }
  0x32   : > { %751 = vmatpush.msra.mxu1 %v1413_v37  ;;  %740 = vmatpush.msra.mxu0 %v692_v22  ;;  %v604_v37 = vlaneseq  ;;  %v1450_v0 = vld [vmem:[%s2300_s3 + $0x2a0] sm:$0xff]  ;;  %v1431_v1 = vld [vmem:[%s2300_s3 + $0x208] sm:$0xff]  ;;  %v1448_v4 = vld [vmem:[%s2300_s3 + $0x290] sm:$0xff] }
  0x33   : > { %777 = vmatpush.msrb.mxu2 %v1426_v54  ;;  %718 = vmatpush.msra.mxu3 %v675_v20  ;;  %v1436_v54 = vld [vmem:[%s2300_s3 + $0x230] sm:$0xff]  ;;  %v1447_v5 = vld [vmem:[%s2300_s3 + $0x288] sm:$0xff] }
  0x34   : > { %752 = vmatpush.msra.mxu1 %v1412_v40  ;;  %741 = vmatpush.msra.mxu0 %v691_v26  ;;  %v1461_v40 = vld [vmem:[%s2300_s3 + $0x2f8] sm:$0xff]  ;;  %vm606_vm1 = vcmp.lt.s32.totalorder %v604_v37, 256 }
  0x35   : > { %778 = vmatpush.msrb.mxu2 %v1425_v58  ;;  %719 = vmatpush.msra.mxu3 %v674_v24  ;;  %608 = vst.msk [vmem:[#allocation2] ss:$8 sm:$0x3] %vm606_vm1, %v1552_v44  ;;  %v1434_v58 = vld [vmem:[%s2300_s3 + $0x220] sm:$0xff]  ;;  %v951_v37 = vld [vmem:[%s2302_s5 + $0x78] sm:$0xff] }
  0x36   : > { %753 = vmatpush.msra.mxu1 %v1411_v42  ;;  %742 = vmatpush.msra.mxu0 %v690_v32  ;;  %v1441_v42 = vld [vmem:[%s2300_s3 + $0x258] sm:$0xff]  ;;  %611 = vst.msk [vmem:[#allocation2 + $0x21] ss:$8 sm:$0x3] %vm606_vm1, %v1552_v44  ;;  %v1470_v44 = vld [vmem:[%s2302_s5 + $0xc0] sm:$0xff] }
  0x37   : > { %779 = vmatpush.msrb.mxu2 %v1424_v62  ;;  %720 = vmatpush.msra.mxu3 %v673_v27  ;;  %v1432_v62 = vld [vmem:[%s2300_s3 + $0x210] sm:$0xff] }
  0x38   : > { %754 = vmatpush.msra.mxu1 %v1410_v46  ;;  %743 = vmatpush.msra.mxu0 %v689_v36  ;;  %v1440_v46 = vld [vmem:[%s2300_s3 + $0x250] sm:$0xff]  ;;  %v1474_v36 = vld [vmem:[%s2302_s5 + $0xe0] sm:$0xff] }
  0x39   : > { %780 = vmatpush.msrb.mxu2 %v1423_v2  ;;  %857 = vmatpush.msrb.mxu3 %v1445_v29  ;;  %v1430_v2 = vld [vmem:[%s2300_s3 + $0x200] sm:$0xff] }
  0x3a   : > { %755 = vmatpush.msra.mxu1 %v1409_v50  ;;  %880 = vmatpush.msrb.mxu0 %v1461_v40  ;;  %v1438_v50 = vld [vmem:[%s2300_s3 + $0x240] sm:$0xff]  ;;  %v1472_v40 = vld [vmem:[%s2302_s5 + $0xd0] sm:$0xff] }
  0x3b   : > { %781 = vmatpush.msrb.mxu2 %v1422_v6  ;;  %858 = vmatpush.msrb.mxu3 %v1444_v31  ;;  %v1446_v6 = vld [vmem:[%s2300_s3 + $0x280] sm:$0xff] }
  0x3c   : > { %756 = vmatpush.msra.mxu1 %v1408_v55  ;;  %881 = vmatpush.msrb.mxu0 %v1460_v43  ;;  %v1455_v55 = vld [vmem:[%s2300_s3 + $0x2c8] sm:$0xff]  ;;  %v948_v43 = vld [vmem:[%s2302_s5 + $0x60] sm:$0xff] }
  0x3d   : > { %782 = vmatpush.msrb.mxu2 %v1421_v10  ;;  %859 = vmatpush.msrb.mxu3 %v1443_v35  ;;  %v1475_v35 = vld [vmem:[%s2302_s5 + $0xe8] sm:$0xff] }
  0x3e   : > { %757 = vmatpush.msra.mxu1 %v1407_v59  ;;  %882 = vmatpush.msrb.mxu0 %v1459_v47  ;;  %v1453_v59 = vld [vmem:[%s2300_s3 + $0x2b8] sm:$0xff] }
  0x3f   : > { %783 = vmatpush.msrb.mxu2 %v1420_v14  ;;  %860 = vmatpush.msrb.mxu3 %v1442_v39  ;;  %v950_v39 = vld [vmem:[%s2302_s5 + $0x70] sm:$0xff]  ;;  %v1493_v47 = vld [vmem:[%s2302_s5 + $0x178] sm:$0xff] }
  0x40   : > { %758 = vmatpush.msra.mxu1 %v1406_v63  ;;  %883 = vmatpush.msrb.mxu0 %v1458_v49  ;;  %v1451_v63 = vld [vmem:[%s2300_s3 + $0x2a8] sm:$0xff]  ;;  %v1468_v49 = vld [vmem:[%s2302_s5 + $0xb0] sm:$0xff] }
  0x41   : > { %784 = vmatpush.msrb.mxu2 %v1419_v19  ;;  %861 = vmatpush.msrb.mxu3 %v1441_v42  ;;  %v1471_v42 = vld [vmem:[%s2302_s5 + $0xc8] sm:$0xff] }
  0x42   : > { %759 = vmatpush.msra.mxu1 %v1405_v3  ;;  %884 = vmatpush.msrb.mxu0 %v1457_v51  ;;  %v1449_v3 = vld [vmem:[%s2300_s3 + $0x298] sm:$0xff]  ;;  %v945_v51 = vld [vmem:[%s2302_s5 + $0x48] sm:$0xff] }
  0x43   : > { %785 = vmatpush.msrb.mxu2 %v1418_v23  ;;  %862 = vmatpush.msrb.mxu3 %v1440_v46  ;;  %v1469_v46 = vld [vmem:[%s2302_s5 + $0xb8] sm:$0xff] }
  0x44   : > { %760 = vmatpush.msra.mxu1 %v1404_v7  ;;  %885 = vmatpush.msrb.mxu0 %v1456_v53  ;;  %v1491_v53 = vld [vmem:[%s2302_s5 + $0x168] sm:$0xff] }
  0x45   : > { %786 = vmatpush.msrb.mxu2 %v1417_v34  ;;  %863 = vmatpush.msrb.mxu3 %v1439_v48  ;;  %v1476_v34 = vld [vmem:[%s2302_s5 + $0xf0] sm:$0xff] }
  0x46   : > { %761 = vmatpush.msra.mxu1 %v1403_v11  ;;  %886 = vmatpush.msrb.mxu0 %v1455_v55  ;;  %v946_v48 = vld [vmem:[%s2302_s5 + $0x50] sm:$0xff]  ;;  %v1466_v55 = vld [vmem:[%s2302_s5 + $0xa0] sm:$0xff] }
  0x47   : > { %787 = vmatpush.msrb.mxu2 %v1416_v38  ;;  %864 = vmatpush.msrb.mxu3 %v1438_v50  ;;  %v1473_v38 = vld [vmem:[%s2302_s5 + $0xd8] sm:$0xff]  ;;  %v1492_v50 = vld [vmem:[%s2302_s5 + $0x170] sm:$0xff] }
  0x48   : > { %762 = vmatpush.msra.mxu1 %v1402_v16  ;;  %887 = vmatpush.msrb.mxu0 %v1454_v57  ;;  %v943_v57 = vld [vmem:[%s2302_s5 + $0x38] sm:$0xff] }
  0x49   : > { %788 = vmatpush.msrb.mxu2 %v1415_v41  ;;  %865 = vmatpush.msrb.mxu3 %v1437_v52  ;;  %v949_v41 = vld [vmem:[%s2302_s5 + $0x68] sm:$0xff] }
  0x4a   : > { %763 = vmatpush.msra.mxu1 %v1401_v21  ;;  %888 = vmatpush.msrb.mxu0 %v1453_v59  ;;  %v1467_v52 = vld [vmem:[%s2302_s5 + $0xa8] sm:$0xff]  ;;  %v1489_v59 = vld [vmem:[%s2302_s5 + $0x158] sm:$0xff] }
  0x4b   : > { %789 = vmatpush.msrb.mxu2 %v1414_v45  ;;  %866 = vmatpush.msrb.mxu3 %v1436_v54  ;;  %v947_v45 = vld [vmem:[%s2302_s5 + $0x58] sm:$0xff]  ;;  %v944_v54 = vld [vmem:[%s2302_s5 + $0x40] sm:$0xff] }
  0x4c   : > { %764 = vmatpush.msra.mxu1 %v1400_v25  ;;  %889 = vmatpush.msrb.mxu0 %v1452_v61  ;;  %v1464_v61 = vld [vmem:[%s2302_s5 + $0x90] sm:$0xff] }
  0x4d   : > { %867 = vmatpush.msrb.mxu3 %v1435_v56  ;;  %v1490_v56 = vld [vmem:[%s2302_s5 + $0x160] sm:$0xff] }
  0x4e   : > { %765 = vmatpush.msra.mxu1 %v1399_v28  ;;  %890 = vmatpush.msrb.mxu0 %v1451_v63  ;;  %v941_v63 = vld [vmem:[%s2302_s5 + $0x28] sm:$0xff] }
  0x4f   : > { %868 = vmatpush.msrb.mxu3 %v1434_v58  ;;  %v1465_v58 = vld [vmem:[%s2302_s5 + $0x98] sm:$0xff] }
  0x50   : > { %766 = vmatpush.msra.mxu1 %v1398_v33  ;;  %891 = vmatpush.msrb.mxu0 %v1450_v0  ;;  %v1477_v33 = vld [vmem:[%s2302_s5 + $0xf8] sm:$0xff]  ;;  %v1463_v0 = vld [vmem:[%s2302_s5 + $0x88] sm:$0xff] }
  0x51   : > { %869 = vmatpush.msrb.mxu3 %v1433_v60  ;;  %v942_v60 = vld [vmem:[%s2302_s5 + $0x30] sm:$0xff] }
  0x52   : > { %892 = vmatpush.msrb.mxu0 %v1449_v3  ;;  %v1462_v3 = vld [vmem:[%s2302_s5 + $0x80] sm:$0xff] }
  0x53   : > { %870 = vmatpush.msrb.mxu3 %v1432_v62  ;;  %v1488_v62 = vld [vmem:[%s2302_s5 + $0x150] sm:$0xff] }
  0x54   : > { %893 = vmatpush.msrb.mxu0 %v1448_v4  ;;  %v1486_v4 = vld [vmem:[%s2302_s5 + $0x140] sm:$0xff] }
  0x55   : > { %871 = vmatpush.msrb.mxu3 %v1431_v1  ;;  %v1487_v1 = vld [vmem:[%s2302_s5 + $0x148] sm:$0xff] }
  0x56   : > { %894 = vmatpush.msrb.mxu0 %v1447_v5  ;;  %v939_v5 = vld [vmem:[%s2302_s5 + $0x18] sm:$0xff] }
  0x57   : > { %872 = vmatpush.msrb.mxu3 %v1430_v2  ;;  %v940_v2 = vld [vmem:[%s2302_s5 + $0x20] sm:$0xff] }
  0x58   : > { %895 = vmatpush.msrb.mxu0 %v1446_v6  ;;  %v1485_v6 = vld [vmem:[%s2302_s5 + $0x138] sm:$0xff] }
  0x8e   : > { %v520_v17 = vpop.f32.mrf.mxu1 }
  0x8f   : > { %574 = vmatmul.f32.vlgmr.msrb.gmra.mxu1 %v520_v17  ;;  %597 = vmatmul.f32.vlgmr.msra.gmra.mxu2 %v520_v17 }
  0x90   : > { %975 = vmatpush.msra.mxu2 %v1477_v33  ;;  %952 = vmatpush.msrb.mxu1 %v951_v37 }
  0x92   : > { %976 = vmatpush.msra.mxu2 %v1476_v34  ;;  %953 = vmatpush.msrb.mxu1 %v950_v39  ;;  %v1063_v34 = vld [vmem:[%s2304_s7 + $0x68] sm:$0xff] }
  0x94   : > { %977 = vmatpush.msra.mxu2 %v1475_v35  ;;  %954 = vmatpush.msrb.mxu1 %v949_v41 }
  0x96   : > { %v523_v30 = vpop.f32.mrf.mxu1  ;;  %978 = vmatpush.msra.mxu2 %v1474_v36  ;;  %955 = vmatpush.msrb.mxu1 %v948_v43 }
  0x97   : > { %577 = vmatmul.f32.gmra.mxu1 %v523_v30  ;;  %600 = vmatmul.f32.gmra.mxu2 %v523_v30 }
  0x98   : > { %979 = vmatpush.msra.mxu2 %v1473_v38  ;;  %956 = vmatpush.msrb.mxu1 %v947_v45  ;;  %v1062_v38 = vld [vmem:[%s2304_s7 + $0x60] sm:$0xff] }
  0x9a   : > { %980 = vmatpush.msra.mxu2 %v1472_v40  ;;  %957 = vmatpush.msrb.mxu1 %v946_v48 }
  0x9c   : > { %981 = vmatpush.msra.mxu2 %v1471_v42  ;;  %958 = vmatpush.msrb.mxu1 %v945_v51 }
  0x9e   : > { %982 = vmatpush.msra.mxu2 %v1470_v44  ;;  %959 = vmatpush.msrb.mxu1 %v944_v54  ;;  %v1059_v54 = vld [vmem:[%s2304_s7 + $0x48] sm:$0xff] }
  0xa0   : > { %983 = vmatpush.msra.mxu2 %v1469_v46  ;;  %960 = vmatpush.msrb.mxu1 %v943_v57  ;;  %v1056_v57 = vld [vmem:[%s2304_s7 + $0x30] sm:$0xff] }
  0xa2   : > { %984 = vmatpush.msra.mxu2 %v1468_v49  ;;  %961 = vmatpush.msrb.mxu1 %v942_v60  ;;  %v1053_v60 = vld [vmem:[%s2304_s7 + $0x18] sm:$0xff] }
  0xa4   : > { %985 = vmatpush.msra.mxu2 %v1467_v52  ;;  %962 = vmatpush.msrb.mxu1 %v941_v63  ;;  %v1061_v52 = vld [vmem:[%s2304_s7 + $0x58] sm:$0xff]  ;;  %v1050_v63 = vld [vmem:[%s2304_s7] sm:$0xff] }
  0xa6   : > { %986 = vmatpush.msra.mxu2 %v1466_v55  ;;  %963 = vmatpush.msrb.mxu1 %v940_v2  ;;  %v1058_v55 = vld [vmem:[%s2304_s7 + $0x40] sm:$0xff] }
  0xa8   : > { %987 = vmatpush.msra.mxu2 %v1465_v58  ;;  %964 = vmatpush.msrb.mxu1 %v939_v5  ;;  %v1055_v58 = vld [vmem:[%s2304_s7 + $0x28] sm:$0xff] }
  0xaa   : > { %988 = vmatpush.msra.mxu2 %v1464_v61  ;;  %v1052_v61 = vld [vmem:[%s2304_s7 + $0x10] sm:$0xff] }
  0xac   : > { %989 = vmatpush.msra.mxu2 %v1463_v0 }
  0xae   : > { %990 = vmatpush.msra.mxu2 %v1462_v3  ;;  %v1531_v3 = vld [vmem:[%s2303_s6] ss:$0 sm:$0xff] }
 0x10c   : > { %v575_v7 = vpop.f32.mrf.mxu1 }
 0x10d   : > { %v618_v8 = vrot.slane %v575_v7, 7  ;;  %767 = vmatmul.f32.vlgmr.msra.gmra.mxu1 %v575_v7  ;;  %v938_v7 = vld [vmem:[%s2302_s5 + $0x10] sm:$0xff] }
 0x10e   : > { %965 = vmatpush.msrb.mxu1 %v938_v7 }
 0x10f   : > { %630 = vst [vmem:[#allocation2] sm:$0xfe] %v618_v8 }
 0x112   : > { %v598_v9 = vpop.f32.mrf.mxu2 }
 0x113   : > { %v619_v10 = vrot.slane %v598_v9, 7  ;;  %790 = vmatmul.f32.vlgmr.msrb.gmra.mxu2 %v598_v9  ;;  %v937_v9 = vld [vmem:[%s2302_s5 + $0x8] sm:$0xff] }
 0x114   : > { %v578_v11 = vpop.f32.mrf.mxu1  ;;  %966 = vmatpush.msrb.mxu1 %v937_v9 }
 0x115   : > { %631 = vst [vmem:[#allocation2 + $0x8] sm:$0xfe] %v619_v10  ;;  %v620_v12 = vrot.slane %v578_v11, 7  ;;  %770 = vmatmul.f32.gmra.mxu1 %v578_v11  ;;  %v936_v11 = vld [vmem:[%s2302_s5] sm:$0xff] }
 0x116   : > { %v669_v13 = vld [vmem:[#allocation2] sm:$0xff]  ;;  %967 = vmatpush.msrb.mxu1 %v936_v11 }
 0x117   : > { %v621_v14 = vsel %vm617_vm2, %v618_v8, %v620_v12  ;;  %634 = vst [vmem:[#allocation2 + $0x20] sm:$0x1] %v620_v12  ;;  %721 = vmatmul.f32.vlgmr.msra.gmra.mxu3 %v669_v13  ;;  %v797_v19 = vld [vmem:[#allocation2] sm:$0xfc]  ;;  %v1484_v8 = vld [vmem:[%s2302_s5 + $0x130] sm:$0xff] }
 0x118   : > { %v843_v20 = vrot.slane %v797_v19, 2  ;;  %v844_v21 = vrot.slane %v621_v14, 2  ;;  %1017 = vmatpush.msra.mxu3 %v1493_v47  ;;  %v1482_v12 = vld [vmem:[%s2302_s5 + $0x120] sm:$0xff] }
 0x11a   : > { %v601_v15 = vpop.f32.mrf.mxu2  ;;  %v845_v23 = vsel %vm842_vm3, %v843_v20, %v844_v21  ;;  %1018 = vmatpush.msra.mxu3 %v1492_v50 }
 0x11b   : > { %v622_v16 = vrot.slane %v601_v15, 7  ;;  %793 = vmatmul.f32.gmra.mxu2 %v601_v15  ;;  %v1481_v15 = vld [vmem:[%s2302_s5 + $0x118] sm:$0xff] }
 0x11c   : > { %v670_v17 = vld [vmem:[#allocation2 + $0x8] sm:$0xff]  ;;  %1019 = vmatpush.msra.mxu3 %v1491_v53  ;;  %v1060_v53 = vld [vmem:[%s2304_s7 + $0x50] sm:$0xff] }
 0x11d   : > { %v623_v18 = vsel %vm617_vm2, %v619_v10, %v622_v16  ;;  %635 = vst [vmem:[#allocation2 + $0x28] sm:$0x1] %v622_v16  ;;  %744 = vmatmul.f32.vlgmr.msra.gmra.mxu0 %v670_v17  ;;  %v798_v22 = vld [vmem:[#allocation2 + $0x8] sm:$0xfc]  ;;  %v1480_v16 = vld [vmem:[%s2302_s5 + $0x110] sm:$0xff] }
 0x11e   : > { %v801_v24 = vld [vmem:[#allocation2 + $0x20] sm:$0x3]  ;;  %v846_v25 = vrot.slane %v798_v22, 2  ;;  %v847_v26 = vrot.slane %v623_v18, 2  ;;  %1020 = vmatpush.msra.mxu3 %v1490_v56  ;;  %v1483_v10 = vld [vmem:[%s2302_s5 + $0x128] sm:$0xff]  ;;  %v1057_v56 = vld [vmem:[%s2304_s7 + $0x38] sm:$0xff] }
 0x11f   : > { %724 = vmatmul.f32.gmra.mxu3 %v621_v14  ;;  %v849_v27 = vrot.slane %v801_v24, 2  ;;  %v1479_v17 = vld [vmem:[%s2302_s5 + $0x108] sm:$0xff] }
 0x120   : > { %v848_v28 = vsel %vm842_vm3, %v846_v25, %v847_v26  ;;  %1021 = vmatpush.msra.mxu3 %v1489_v59  ;;  %v1054_v59 = vld [vmem:[%s2304_s7 + $0x20] sm:$0xff] }
 0x121   : > { %v850_v30 = vsel %vm842_vm3, %v844_v21, %v849_v27 }
 0x122   : > { %1022 = vmatpush.msra.mxu3 %v1488_v62  ;;  %v1051_v62 = vld [vmem:[%s2304_s7 + $0x8] sm:$0xff] }
 0x124   : > { %v802_v29 = vld [vmem:[#allocation2 + $0x28] sm:$0x3]  ;;  %1023 = vmatpush.msra.mxu3 %v1487_v1 }
 0x125   : > { %747 = vmatmul.f32.gmra.mxu0 %v623_v18  ;;  %v851_v31 = vrot.slane %v802_v29, 2  ;;  %v1478_v18 = vld [vmem:[%s2302_s5 + $0x100] sm:$0xff] }
 0x126   : > { %1024 = vmatpush.msra.mxu3 %v1486_v4 }
 0x127   : > { %873 = vmatmul.f32.vlgmr.msrb.gmra.mxu3 %v845_v23  ;;  %v852_v32 = vsel %vm842_vm3, %v847_v26, %v851_v31  ;;  %v1065_v31 = vld [vmem:[%s2304_s7 + $0x78] sm:$0xff] }
 0x128   : > { %1025 = vmatpush.msra.mxu3 %v1485_v6  ;;  %1068 = vmatpush.msra.mxu0 %v1065_v31 }
 0x12a   : > { %1026 = vmatpush.msra.mxu3 %v1484_v8 }
 0x12c   : > { %1027 = vmatpush.msra.mxu3 %v1483_v10 }
 0x12d   : > { %896 = vmatmul.f32.vlgmr.msrb.gmra.mxu0 %v848_v28 }
 0x12e   : > { %1028 = vmatpush.msra.mxu3 %v1482_v12 }
 0x12f   : > { %876 = vmatmul.f32.gmra.mxu3 %v850_v30  ;;  %v1530_v30 = vld [vmem:[%s2301_s4] ss:$0 sm:$0xff] }
 0x130   : > { %1029 = vmatpush.msra.mxu3 %v1481_v15 }
 0x132   : > { %1030 = vmatpush.msra.mxu3 %v1480_v16 }
 0x134   : > { %1031 = vmatpush.msra.mxu3 %v1479_v17 }
 0x135   : > { %899 = vmatmul.f32.gmra.mxu0 %v852_v32  ;;  %v1064_v32 = vld [vmem:[%s2304_s7 + $0x70] sm:$0xff] }
 0x136   : > { %1032 = vmatpush.msra.mxu3 %v1478_v18  ;;  %1069 = vmatpush.msra.mxu0 %v1064_v32 }
 0x138   : > { %1070 = vmatpush.msra.mxu0 %v1063_v34 }
 0x13a   : > { %1071 = vmatpush.msra.mxu0 %v1062_v38 }
 0x13c   : > { %1072 = vmatpush.msra.mxu0 %v1061_v52 }
 0x13e   : > { %1073 = vmatpush.msra.mxu0 %v1060_v53 }
 0x140   : > { %1074 = vmatpush.msra.mxu0 %v1059_v54 }
 0x142   : > { %1075 = vmatpush.msra.mxu0 %v1058_v55 }
 0x144   : > { %1076 = vmatpush.msra.mxu0 %v1057_v56 }
 0x146   : > { %1077 = vmatpush.msra.mxu0 %v1056_v57 }
 0x148   : > { %1078 = vmatpush.msra.mxu0 %v1055_v58 }
 0x14a   : > { %1079 = vmatpush.msra.mxu0 %v1054_v59 }
 0x14c   : > { %1080 = vmatpush.msra.mxu0 %v1053_v60 }
 0x14e   : > { %1081 = vmatpush.msra.mxu0 %v1052_v61 }
 0x150   : > { %1082 = vmatpush.msra.mxu0 %v1051_v62 }
 0x152   : > { %1083 = vmatpush.msra.mxu0 %v1050_v63 }
 0x18a   : > { %v768_v22 = vpop.f32.mrf.mxu1 }
 0x192   : > { %v771_v35 = vpop.f32.mrf.mxu1 }
 0x196   : > { %v791_v24 = vpop.f32.mrf.mxu2 }
 0x19a   : > { %v722_v13 = vpop.f32.mrf.mxu3  ;;  %v745_v14 = vpop.f32.mrf.mxu0 }
 0x19b   : > { %v746_v21 = vadd.f32 %v745_v14, %v722_v13 }
 0x19d   : > { %v769_v23 = vadd.f32 %v768_v22, %v746_v21  ;;  %v1130_v22 = vld [vmem:[%s2305_s8 + $0x8] sm:$0xff] }
 0x19e   : > { %v794_v39 = vpop.f32.mrf.mxu2  ;;  %1320 = vmatpush.msrb.mxu0 %v1130_v22 }
 0x19f   : > { %v792_v28 = vadd.f32 %v791_v24, %v769_v23  ;;  %v1129_v24 = vld [vmem:[%s2305_s8] sm:$0xff] }
 0x1a0   : > { %1321 = vmatpush.msrb.mxu0 %v1129_v24  ;;  %v1225_v24 = vld [vmem:[%s2309_s12] sm:$0xf] }
 0x1a1   : > { %1497 = vmatpush.msk.msrb.mxu2 %vm1231_vm13, %v1225_v24 }
 0x1a2   : > { %v725_v19 = vpop.f32.mrf.mxu3  ;;  %v748_v20 = vpop.f32.mrf.mxu0 }
 0x1a3   : > { %v749_v27 = vadd.f32 %v748_v20, %v725_v19 }
 0x1a5   : > { %v772_v36 = vadd.f32 %v771_v35, %v749_v27  ;;  %v1199_v27 = vld [vmem:[%s2307_s10] sm:$0xff] }
 0x1a6   : > { %1219 = vmatpush.msra.mxu1 %v1199_v27 }
 0x1a7   : > { %v795_v43 = vadd.f32 %v794_v39, %v772_v36 }
 0x1aa   : > { %v874_v25 = vpop.f32.mrf.mxu3  ;;  %v897_v26 = vpop.f32.mrf.mxu0 }
 0x1ab   : > { %v898_v29 = vadd.f32 %v897_v26, %v874_v25 }
 0x1ad   : > { %v903_v33 = vadd.f32 %v898_v29, %v792_v28 }
 0x1af   : > { %v909_v37 = vadd.f32 %v1530_v30, %v903_v33 }
 0x1b1   : > { %v911_v40 = vmax.f32 %v909_v37, 0.0 }
 0x1b2   : > { %v877_v41 = vpop.f32.mrf.mxu3  ;;  %v900_v42 = vpop.f32.mrf.mxu0 }
 0x1b3   : > { %915 = vst [vmem:[#allocation3 + $0x1] sm:$0xff] %v911_v40  ;;  %v901_v44 = vadd.f32 %v900_v42, %v877_v41  ;;  %991 = vmatmul.f32.vlgmr.msra.gmra.mxu2 %v911_v40 }
 0x1b5   : > { %v904_v45 = vadd.f32 %v901_v44, %v795_v43 }
 0x1b7   : > { %v910_v46 = vadd.f32 %v1530_v30, %v904_v45 }
 0x1b9   : > { %v912_v47 = vmax.f32 %v910_v46, 0.0 }
 0x1ba   : > { %v934_v48 = vld [vmem:[#allocation3] sm:$0xff] }
 0x1bb   : > { %968 = vmatmul.f32.vlgmr.msrb.gmra.mxu1 %v934_v48  ;;  %916 = vst [vmem:[#allocation3 + $0x9] sm:$0xff] %v912_v47  ;;  %994 = vmatmul.f32.gmra.mxu2 %v912_v47 }
 0x1c2   : > { %v935_v49 = vld [vmem:[#allocation3 + $0x8] sm:$0xff] }
 0x1c3   : > { %v998_v50 = vld [vmem:[#allocation3 + $0x2] sm:$0xff]  ;;  %971 = vmatmul.f32.gmra.mxu1 %v935_v49  ;;  %v999_v51 = vld [vmem:[#allocation3 + $0xa] sm:$0xff] }
 0x1c4   : > { %1033 = vmatmul.f32.vlgmr.msra.gmra.mxu3 %v998_v50 }
 0x1cc   : > { %1036 = vmatmul.f32.gmra.mxu3 %v999_v51 }
 0x236   : > { %v992_v1 = vpop.f32.mrf.mxu2 }
 0x238   : > { %v969_v0 = vpop.f32.mrf.mxu1 }
 0x239   : > { %v993_v2 = vadd.f32 %v992_v1, %v969_v0 }
 0x23e   : > { %v995_v9 = vpop.f32.mrf.mxu2 }
 0x240   : > { %v972_v7 = vpop.f32.mrf.mxu1 }
 0x241   : > { %v996_v10 = vadd.f32 %v995_v9, %v972_v7 }
 0x247   : > { %v1034_v4 = vpop.f32.mrf.mxu3 }
 0x248   : > { %v1040_v5 = vadd.f32 %v1034_v4, %v993_v2 }
 0x24a   : > { %v1046_v6 = vadd.f32 %v1531_v3, %v1040_v5 }
 0x24c   : > { %v2255_v8 = vmax.f32 %v1046_v6, 0.0 }
 0x24e   : > { %1084 = vmatmul.f32.vlgmr.msra.gmra.mxu0 %v2255_v8 }
 0x24f   : > { %v1037_v11 = vpop.f32.mrf.mxu3 }
 0x250   : > { %v1041_v12 = vadd.f32 %v1037_v11, %v996_v10 }
 0x252   : > { %v1047_v13 = vadd.f32 %v1531_v3, %v1041_v12 }
 0x254   : > { %v2258_v14 = vmax.f32 %v1047_v13, 0.0 }
 0x256   : > { %v1131_v15 = vmax.f32 %v2255_v8, %v2258_v14  ;;  %1087 = vmatmul.f32.gmra.mxu0 %v2258_v14 }
 0x258   : > { %v1132_v16 = vrot.slane %v1131_v15, 4 }
 0x25a   : > { %v1133_v17 = vmax.f32 %v1131_v15, %v1132_v16 }
 0x25c   : > { %v1134_v18 = vrot.slane %v1133_v17, 2 }
 0x25e   : > { %v1135_v19 = vmax.f32 %v1133_v17, %v1134_v18 }
 0x260   : > { %v1136_v20 = vrot.slane %v1135_v19, 1 }
 0x262   : > { %v1137_v21 = vmax.f32 %v1135_v19, %v1136_v20 }
 0x264   : > { %1155 = vrot.lane.b32.xlu2 %v1137_v21, %s1553_s25  ;;  %1147 = vrot.lane.b32.xlu1 %v1137_v21, %s1554_s26  ;;  %s1567_s25 = smov 24   ;;  %s1066_s26 = sld [smem:[#allocation4]] }
 0x265   : > { %1139 = vrot.lane.b32.xlu0 %v1137_v21, %s1555_s27  ;;  %s1505_s27 = sshll.u32 %s2314_s21, 4 }
 0x26a   : > { %v1067_v23 = vstv %s1066_s26 }
 0x26c   : > { %1159 = vrot.lane.b32.xlu2 %v1137_v21, %s1556_s28  ;;  %1151 = vrot.lane.b32.xlu1 %v1137_v21, %s1557_s29 }
 0x26d   : > { %1143 = vrot.lane.b32.xlu0 %v1137_v21, %s1558_s30  ;;  %s492_s30 = scalar_lea.vmem %s2312_s15, %s1505_s27 }
 0x274   : > { %1171 = vrot.lane.b32.xlu2 %v1137_v21, %s1559_s16  ;;  %1167 = vrot.lane.b32.xlu1 %v1137_v21, %s1560_s17 }
 0x275   : > { %1163 = vrot.lane.b32.xlu0 %v1137_v21, %s1561_s18 }
 0x27c   : > { %1183 = vrot.lane.b32.xlu2 %v1137_v21, %s1562_s19  ;;  %1179 = vrot.lane.b32.xlu1 %v1137_v21, %s1563_s22 }
 0x27d   : > { %1175 = vrot.lane.b32.xlu0 %v1137_v21, %s1564_s23 }
 0x284   : > { %1195 = vrot.lane.b32.xlu2 %v1137_v21, %s1565_s14  ;;  %1191 = vrot.lane.b32.xlu1 %v1137_v21, %s1566_s24 }
 0x285   : > { %1187 = vrot.lane.b32.xlu0 %v1137_v21, %s1567_s25 }
 0x2be   : > { %v1156_v29 = vpop.permute.xlu2 %1155 }
 0x2c6   : > { %v1160_v37 = vpop.permute.xlu2 %1159 }
 0x2cb   : > { %v1085_v25 = vpop.f32.mrf.mxu0 }
 0x2cc   : > { %v1086_v26 = vadd.f32 %v1085_v25, %v1067_v23  ;;  %v1200_v25 = vld [vmem:[%s2308_s11] sm:$0x1] }
 0x2ce   : > { %v1494_v28 = vmul.f32 -1.442695, %v1086_v26  ;;  %v1172_v56 = vpop.permute.xlu2 %1171 }
 0x2d0   : > { %1532 = vpow2.f32 %v1494_v28 }
 0x2d3   : > { %v1088_v30 = vpop.f32.mrf.mxu0 }
 0x2d4   : > { %v1089_v31 = vadd.f32 %v1088_v30, %v1067_v23  ;;  %v1226_v30 = vld [vmem:[%s2310_s13] sm:$0x1] }
 0x2d6   : > { %v1533_v32 = vpop.eup %1532  ;;  %v1495_v33 = vmul.f32 -1.442695, %v1089_v31  ;;  %v1148_v34 = vpop.permute.xlu1 %1147 }
 0x2d7   : > { %v1097_v35 = vadd.f32 1.0, %v1533_v32  ;;  %v1140_v36 = vpop.permute.xlu0 %1139  ;;  %v1184_v13 = vpop.permute.xlu2 %1183 }
 0x2d8   : > { %1534 = vpow2.f32 %v1495_v33  ;;  %v1142_v39 = vmax.f32 %v1137_v21, %v1140_v36 }
 0x2d9   : > { %1536 = vrcp.f32 %v1097_v35  ;;  %v1110_v48 = vand.u32 2147483648, %v1097_v35  ;;  %v1108_v51 = vand.u32 2147483647, %v1097_v35  ;;  %vm1104_vm5 = vweird.f32 %v1097_v35 }
 0x2db   : > { %v1111_v58 = vor.u32 1.1754944e-38, %v1110_v48  ;;  %vm1109_vm8 = vcmp.eq.f32.partialorder %v1108_v51, 8.507059e+37 }
 0x2de   : > { %v1535_v38 = vpop.eup %1534  ;;  %v1152_v40 = vpop.permute.xlu1 %1151 }
 0x2df   : > { %v1537_v41 = vpop.eup %1536  ;;  %v1098_v42 = vadd.f32 1.0, %v1535_v38  ;;  %v1144_v43 = vpop.permute.xlu0 %1143 }
 0x2e0   : > { %v1100_v44 = vmul.f32 %v1537_v41, %v1097_v35  ;;  %v1146_v45 = vmax.f32 %v1142_v39, %v1144_v43  ;;  %vm1105_vm4 = vweird.f32 %v1537_v41  ;;  %v1196_v22 = vpop.permute.xlu2 %1195 }
 0x2e1   : > { %1538 = vrcp.f32 %v1098_v42  ;;  %vm1106_vm6 = vmor %vm1104_vm5, %vm1105_vm4  ;;  %v1125_v1 = vand.u32 2147483648, %v1098_v42  ;;  %v1123_v4 = vand.u32 2147483647, %v1098_v42  ;;  %vm1119_vm10 = vweird.f32 %v1098_v42 }
 0x2e2   : > { %v1101_v46 = vsub.f32 1.0, %v1100_v44  ;;  %v1150_v47 = vmax.f32 %v1146_v45, %v1148_v34 }
 0x2e3   : > { %v1126_v10 = vor.u32 1.1754944e-38, %v1125_v1  ;;  %vm1124_vm12 = vcmp.eq.f32.partialorder %v1123_v4, 8.507059e+37 }
 0x2e4   : > { %v1154_v49 = vmax.f32 %v1150_v47, %v1152_v40  ;;  %v1102_v50 = vmul.f32 %v1537_v41, %v1101_v46 }
 0x2e6   : > { %v1168_v52 = vpop.permute.xlu1 %1167  ;;  %v1158_v53 = vmax.f32 %v1154_v49, %v1156_v29  ;;  %v1103_v54 = vadd.f32 %v1537_v41, %v1102_v50  ;;  %v1274_v29 = vld [vmem:[%s2306_s9] sm:$0xff] }
 0x2e7   : > { %v1539_v55 = vpop.eup %1538  ;;  %v1164_v57 = vpop.permute.xlu0 %1163  ;;  %1293 = vmatpush.msrb.mxu3 %v1274_v29 }
 0x2e8   : > { %v1162_v59 = vmax.f32 %v1158_v53, %v1160_v37  ;;  %v1107_v60 = vsel %vm1106_vm6, %v1537_v41, %v1103_v54  ;;  %v1115_v61 = vmul.f32 %v1539_v55, %v1098_v42  ;;  %vm1120_vm9 = vweird.f32 %v1539_v55 }
 0x2e9   : > { %v1112_v62 = vsel %vm1109_vm8, %v1111_v58, %v1107_v60  ;;  %vm1121_vm11 = vmor %vm1119_vm10, %vm1120_vm9 }
 0x2ea   : > { %v1166_v63 = vmax.f32 %v1162_v59, %v1164_v57  ;;  %1501 = vmatmul.msk.f32.vlgmr.msrb.gmra.mxu0 %vm1299_vm7, %v1112_v62  ;;  %v1116_v0 = vsub.f32 1.0, %v1115_v61 }
 0x2ec   : > { %v1170_v2 = vmax.f32 %v1166_v63, %v1168_v52  ;;  %v1117_v3 = vmul.f32 %v1539_v55, %v1116_v0 }
 0x2ee   : > { %v1174_v5 = vmax.f32 %v1170_v2, %v1172_v56  ;;  %v1118_v6 = vadd.f32 %v1539_v55, %v1117_v3  ;;  %v1180_v7 = vpop.permute.xlu1 %1179 }
 0x2ef   : > { %v1176_v9 = vpop.permute.xlu0 %1175 }
 0x2f0   : > { %v1178_v11 = vmax.f32 %v1174_v5, %v1176_v9  ;;  %v1122_v12 = vsel %vm1121_vm11, %v1539_v55, %v1118_v6 }
 0x2f1   : > { %v1127_v15 = vsel %vm1124_vm12, %v1126_v10, %v1122_v12 }
 0x2f2   : > { %v1182_v16 = vmax.f32 %v1178_v11, %v1180_v7  ;;  %1502 = vmatmul.msk.f32.gmra.mxu0 %vm1299_vm7, %v1127_v15 }
 0x2f4   : > { %v1186_v17 = vmax.f32 %v1182_v16, %v1184_v13 }
 0x2f6   : > { %v1192_v20 = vpop.permute.xlu1 %1191 }
 0x2f7   : > { %v1188_v18 = vpop.permute.xlu0 %1187 }
 0x2f8   : > { %v1190_v19 = vmax.f32 %v1186_v17, %v1188_v18 }
 0x2fa   : > { %v1194_v21 = vmax.f32 %v1190_v19, %v1192_v20 }
 0x2fc   : > { %v1198_v23 = vmax.f32 %v1194_v21, %v1196_v22 }
 0x2fe   : > { %1496 = vmatmul.msk.f32.vlgmr.msra.gmra.mxu1 %vm496_vm0, %v1198_v23 }
 0x367   : > { %v1323_v46 = vpop.f32.mrf.mxu0 }
 0x36f   : > { %v1326_v49 = vpop.f32.mrf.mxu0 }
 0x37b   : > { %v1221_v26 = vpop.f32.mrf.mxu1 }
 0x37c   : > { %v1222_v27 = vadd.f32 %v1221_v26, %v1200_v25 }
 0x37e   : > { %v1224_v28 = vmax.f32 %v1222_v27, 0.0 }
 0x380   : > { %1498 = vmatmul.msk.f32.vlgmr.msrb.gmra.mxu2 %vm1227_vm14, %v1224_v28 }
 0x403   : > { %v1252_v31 = vpop.f32.mrf.mxu2 }
 0x404   : > { %v1253_v32 = vadd.f32 %v1252_v31, %v1226_v30 }
 0x406   : > { %v1499_v33 = vmul.f32 -1.442695, %v1253_v32 }
 0x408   : > { %1540 = vpow2.f32 %v1499_v33 }
 0x40e   : > { %v1541_v34 = vpop.eup %1540 }
 0x40f   : > { %v1258_v35 = vadd.f32 1.0, %v1541_v34 }
 0x411   : > { %1542 = vrcp.f32 %v1258_v35  ;;  %v1270_v39 = vand.u32 2147483648, %v1258_v35  ;;  %v1268_v41 = vand.u32 2147483647, %v1258_v35  ;;  %vm1264_vm1 = vweird.f32 %v1258_v35 }
 0x413   : > { %v1271_v43 = vor.u32 1.1754944e-38, %v1270_v39  ;;  %vm1269_vm3 = vcmp.eq.f32.partialorder %v1268_v41, 8.507059e+37 }
 0x417   : > { %v1543_v36 = vpop.eup %1542 }
 0x418   : > { %v1260_v37 = vmul.f32 %v1543_v36, %v1258_v35  ;;  %vm1265_vm15 = vweird.f32 %v1543_v36 }
 0x419   : > { %vm1266_vm2 = vmor %vm1264_vm1, %vm1265_vm15 }
 0x41a   : > { %v1261_v38 = vsub.f32 1.0, %v1260_v37 }
 0x41c   : > { %v1262_v40 = vmul.f32 %v1543_v36, %v1261_v38 }
 0x41e   : > { %v1263_v42 = vadd.f32 %v1543_v36, %v1262_v40 }
 0x420   : > { %v1267_v44 = vsel %vm1266_vm2, %v1543_v36, %v1263_v42 }
 0x421   : > { %v1272_v45 = vsel %vm1269_vm3, %v1271_v43, %v1267_v44 }
 0x422   : > { %1500 = vmatmul.msk.f32.vlgmr.msrb.gmra.mxu3 %vm496_vm0, %v1272_v45 }
 0x4a5   : > { %v1295_v47 = vpop.f32.mrf.mxu3 }
 0x4a6   : > { %v1298_v48 = vperm.slane %v1295_v47, 0 }
 0x4a8   : > { %v1324_v50 = vadd.f32 %v1323_v46, %v1298_v48  ;;  %v1327_v51 = vadd.f32 %v1326_v49, %v1298_v48 }
 0x4aa   : > { %v1329_v52 = vmul.f32 %v1324_v50, %v2255_v8  ;;  %v1330_v53 = vmul.f32 %v1327_v51, %v2258_v14 }
 0x4ac   : > { %1331 = vst [vmem:[%s492_s30] sm:$0xff] %v1329_v52 }
 0x4ad   : > { %1332 = vst [vmem:[%s492_s30 + $0x8] sm:$0xff] %v1330_v53 }
 0x4ae PF: > { %s26_s20 = sadd.s32 1, %s1550_s20  }
 0x4af   : > { %p23_p4 = scmp.ge.s32.totalorder %s26_s20, 4  }
 0x4b1   :  { %25 = sbr.rel (!%p23_p4) target bundleno = 2 (0x2), region = 115 }

</bundles_post_ra>
